<compile_context>
chip_gen: v6e
topology: v6e:2x2x1
jax: 0.10.0
libtpu: 0.0.40
codegen_flags: <defaults>
</compile_context>

<pallas_src>
from functools import partial

import jax
import jax.numpy as jnp
from jax import lax
from jax.experimental import pallas as pl
from jax.experimental.pallas import tpu as pltpu


def _prt_kernel(x_ref, slab_ref, o_ref, h_all_ref, *, hidden_dim):
    B, N, F = x_ref.shape            # batch, seq (= n_nodes), features (= n_nodes)
    H = hidden_dim
    f32 = jnp.float32

    # ---- Static slab views (single DMA'd operand; slicing is free).
    # Row layout (lane width W = max(3H, F)):
    #   [0:F]              w_i_all  (F, 3H)   input weights, gates r|z|n on lanes
    #   [F:F+H]            w_h_all  (H, 3H)   hidden weights, gates r|z|n on lanes
    #   [F+H:F+2H]         w_fc1    (H, F)    fc1 weight, transposed
    #   [F+2H]             b_i_all  (1, 3H)   [b_ir+b_hr | b_iz+b_hz | b_in]
    #   [F+2H+1]           b_hn     (1, H)
    #   [F+2H+2]           b_fc1    (1, F)
    r0 = F + 2 * H
    w_i_all = slab_ref[0:F, 0:3 * H]
    w_h_all = slab_ref[F:F + H, 0:3 * H]
    w_fc1 = slab_ref[F + H:F + 2 * H, 0:F]
    b_i_all = slab_ref[r0:r0 + 1, 0:3 * H]
    b_hn = slab_ref[r0 + 1:r0 + 2, 0:H]
    b_fc1 = slab_ref[r0 + 2:r0 + 3, 0:F]

    # ---- Input-side gate pre-activations for all timesteps: one fused matmul.
    x2 = x_ref[...].reshape(B * N, F)                     # row b*N + t == x[b, t, :]
    gi = (jnp.dot(x2, w_i_all, preferred_element_type=f32)
          + b_i_all).reshape(B, N, 3 * H)                 # (B, N, 3H)

    # ---- Serial GRU recurrence, fully unrolled, one fused hidden matmul/step.
    # PyTorch gate order / formulas:
    #   r = sig(W_ir x + b_ir + W_hr h + b_hr)      (input+hidden biases folded)
    #   z = sig(W_iz x + b_iz + W_hz h + b_hz)      (folded)
    #   n = tanh(W_in x + b_in + r * (W_hn h + b_hn))
    #   h = (1 - z) * n + z * h  ==  n + z * (h - n)
    h = jnp.zeros((B, H), f32)                            # h0 = zeros
    for t in range(N):
        gh = jnp.dot(h, w_h_all, preferred_element_type=f32)     # (B, 3H)
        gi_t = gi[:, t, :]                                        # (B, 3H)
        r = jax.nn.sigmoid(gi_t[:, 0:H] + gh[:, 0:H])
        z = jax.nn.sigmoid(gi_t[:, H:2 * H] + gh[:, H:2 * H])
        n = jnp.tanh(gi_t[:, 2 * H:3 * H] + r * (gh[:, 2 * H:3 * H] + b_hn))
        h = n + z * (h - n)
        h_all_ref[:, pl.ds(t, 1), :] = h[:, None, :]              # (B, N, H) scratch

    # ---- fc1 + leaky_relu: one matmul, one full-block store.
    hs = h_all_ref[...].reshape(B * N, H)                 # free leading-dim merge
    out = jnp.dot(hs, w_fc1, preferred_element_type=f32) + b_fc1   # (B*N, F)
    out = jnp.where(out > 0, out, 0.01 * out)
    o_ref[...] = out.reshape(B, N, F).astype(o_ref.dtype)


def prepare_params(params):
    """One-time repack of GRU/fc1 weights into a single VMEM-friendly slab.

    Do this ONCE (at init), not per forward call."""
    w_ih, w_hh = params["w_ih"], params["w_hh"]           # (3H, N), (3H, H)
    b_ih, b_hh = params["b_ih"], params["b_hh"]           # (3H,),   (3H,)
    H = w_hh.shape[1]
    N = w_ih.shape[1]
    F = N
    W = max(3 * H, F)

    # Per-gate, pre-transposed weights (PyTorch gate order: r, z, n),
    # concatenated along lanes.
    w_i_all = jnp.concatenate(
        [w_ih[0 * H:1 * H].T, w_ih[1 * H:2 * H].T, w_ih[2 * H:3 * H].T], axis=1)  # (F, 3H)
    w_h_all = jnp.concatenate(
        [w_hh[0 * H:1 * H].T, w_hh[1 * H:2 * H].T, w_hh[2 * H:3 * H].T], axis=1)  # (H, 3H)
    w_fc1_t = params["w_fc1"].T                                                    # (H, F)
    # r/z gates: input & hidden biases fold; the n gate's hidden bias must stay
    # inside the r * (.) term.
    b_i_all = jnp.concatenate(
        [b_ih[0 * H:1 * H] + b_hh[0 * H:1 * H],
         b_ih[1 * H:2 * H] + b_hh[1 * H:2 * H],
         b_ih[2 * H:3 * H]])[None, :]                                              # (1, 3H)
    b_hn = b_hh[2 * H:3 * H][None, :]                                              # (1, H)
    b_fc1 = params["b_fc1"][None, :]                                               # (1, F)

    def pad_w(a):
        return jnp.pad(a, ((0, 0), (0, W - a.shape[1]))).astype(jnp.float32)

    slab = jnp.concatenate(
        [pad_w(w_i_all), pad_w(w_h_all), pad_w(w_fc1_t),
         pad_w(b_i_all), pad_w(b_hn), pad_w(b_fc1)], axis=0)   # (F + 2H + 3, W)
    return {"slab": slab, "hidden_dim": H}


@partial(jax.jit, static_argnames=("hidden_dim",))
def prt_layer_forward(x, slab, hidden_dim):
    """x: (B, N, N) float32, slab: prepacked weights -> (B, N, N) float32."""
    B, N, N2 = x.shape
    assert N == N2
    return pl.pallas_call(
        partial(_prt_kernel, hidden_dim=hidden_dim),
        out_shape=jax.ShapeDtypeStruct((B, N, N), x.dtype),
        in_specs=[pl.BlockSpec(memory_space=pltpu.MemorySpace.VMEM),
                  pl.BlockSpec(memory_space=pltpu.MemorySpace.VMEM)],
        out_specs=pl.BlockSpec(memory_space=pltpu.MemorySpace.VMEM),
        scratch_shapes=[pltpu.VMEM((B, N, hidden_dim), jnp.float32)],
    )(x, slab)


def prt_layer_ref(x, params):
    """Pure-JAX reference (mirrors torch.nn.GRU + Linear + leaky_relu)."""
    B, N, _ = x.shape
    H = params["w_hh"].shape[1]
    w_ih, w_hh = params["w_ih"], params["w_hh"]
    b_ih, b_hh = params["b_ih"], params["b_hh"]
    x_seq = jnp.transpose(x, (1, 0, 2))

    def step(h_prev, x_t):
        gi = x_t @ w_ih.T + b_ih
        gh = h_prev @ w_hh.T + b_hh
        i_r, i_z, i_n = jnp.split(gi, 3, axis=-1)
        h_r, h_z, h_n = jnp.split(gh, 3, axis=-1)
        r = jax.nn.sigmoid(i_r + h_r)
        z = jax.nn.sigmoid(i_z + h_z)
        n = jnp.tanh(i_n + r * h_n)
        h = (1.0 - z) * n + z * h_prev
        return h, h

    h0 = jnp.zeros((B, H), jnp.float32)
    _, hs = lax.scan(step, h0, x_seq)                # (N, B, H)
    hs = jnp.transpose(hs, (1, 0, 2))                # (B, N, H)
    out = hs @ params["w_fc1"].T + params["b_fc1"]
    return jnp.where(out > 0, out, 0.01 * out)


def init_params(key, n_nodes, hidden_dim):
    """Deterministic synthetic weights (PyTorch-style uniform(-1/sqrt(H), 1/sqrt(H)))."""
    ks = jax.random.split(key, 6)
    k = 1.0 / jnp.sqrt(jnp.float32(hidden_dim))
    u = lambda kk, shape: jax.random.uniform(kk, shape, jnp.float32, -k, k)
    return {
        "w_ih":  u(ks[0], (3 * hidden_dim, n_nodes)),    # GRU weight_ih_l0
        "w_hh":  u(ks[1], (3 * hidden_dim, hidden_dim)), # GRU weight_hh_l0
        "b_ih":  u(ks[2], (3 * hidden_dim,)),            # GRU bias_ih_l0
        "b_hh":  u(ks[3], (3 * hidden_dim,)),            # GRU bias_hh_l0
        "w_fc1": u(ks[4], (n_nodes, hidden_dim)),        # fc1.weight
        "b_fc1": u(ks[5], (n_nodes,)),                   # fc1.bias
    }


if __name__ == "__main__":
    B, N, H = 2, 16, 32   # batch, n_nodes (seq len == feature dim), hadden_dim

    key = jax.random.PRNGKey(0)
    kx, kp = jax.random.split(key)
    x = jax.random.normal(kx, (B, N, N), jnp.float32)
    params = init_params(kp, N, H)

    # One-time weight repack (out of the per-call path).
    packed = prepare_params(params)
    slab = jax.block_until_ready(packed["slab"])

    out = jax.block_until_ready(prt_layer_forward(x, slab, packed["hidden_dim"]))
    ref = jax.block_until_ready(prt_layer_ref(x, params))

    assert out.shape == (B, N, N)
    assert jnp.allclose(out, ref, rtol=1e-5, atol=1e-4), (
        float(jnp.max(jnp.abs(out - ref))))
    print("KERNEL_OK")
</pallas_src>

<mosaic_0001>
module attributes {stable_mosaic.version = 11 : i64} {
  func.func @_prt_kernel(%arg0: memref<2x16x16xf32, #tpu.memory_space<vmem>>, %arg1: memref<83x96xf32, #tpu.memory_space<vmem>>, %arg2: memref<2x16x16xf32, #tpu.memory_space<vmem>>, %arg3: memref<2x16x32xf32, #tpu.memory_space<vmem>>) attributes {dimension_semantics = [], scalar_prefetch = 0 : i64, scratch_operands = 1 : i64, tpu.core_type = #tpu.core_type<tc>} {
    %c0 = arith.constant 0 : index
    %c0_0 = arith.constant 0 : index
    %0 = vector.load %arg1[%c0, %c0_0] : memref<83x96xf32, #tpu.memory_space<vmem>>, vector<16x96xf32>
    %c16 = arith.constant 16 : index
    %c0_1 = arith.constant 0 : index
    %1 = vector.load %arg1[%c16, %c0_1] : memref<83x96xf32, #tpu.memory_space<vmem>>, vector<32x96xf32>
    %c48 = arith.constant 48 : index
    %c0_2 = arith.constant 0 : index
    %2 = vector.load %arg1[%c48, %c0_2] : memref<83x96xf32, #tpu.memory_space<vmem>>, vector<32x16xf32>
    %c80 = arith.constant 80 : index
    %c0_3 = arith.constant 0 : index
    %3 = vector.load %arg1[%c80, %c0_3] : memref<83x96xf32, #tpu.memory_space<vmem>>, vector<1x96xf32>
    %c81 = arith.constant 81 : index
    %c0_4 = arith.constant 0 : index
    %4 = vector.load %arg1[%c81, %c0_4] : memref<83x96xf32, #tpu.memory_space<vmem>>, vector<1x32xf32>
    %c82 = arith.constant 82 : index
    %c0_5 = arith.constant 0 : index
    %5 = vector.load %arg1[%c82, %c0_5] : memref<83x96xf32, #tpu.memory_space<vmem>>, vector<1x16xf32>
    %c0_6 = arith.constant 0 : index
    %c0_7 = arith.constant 0 : index
    %c0_8 = arith.constant 0 : index
    %6 = vector.load %arg0[%c0_6, %c0_7, %c0_8] : memref<2x16x16xf32, #tpu.memory_space<vmem>>, vector<2x16x16xf32>
    %7 = vector.shape_cast %6 : vector<2x16x16xf32> to vector<32x16xf32>
    %cst = arith.constant dense<0.000000e+00> : vector<32x96xf32>
    %8 = tpu.matmul %7, %0, %cst {dimension_numbers = #tpu.dot_dimension_numbers<[1], [0], [0], [1], [0, 0, 1, 1], [], []>} : vector<32x16xf32>, vector<16x96xf32>, vector<32x96xf32> -> vector<32x96xf32>
    %9 = vector.broadcast %3 : vector<1x96xf32> to vector<32x96xf32>
    %10 = arith.addf %8, %9 : vector<32x96xf32>
    %11 = vector.shape_cast %10 : vector<32x96xf32> to vector<2x16x96xf32>
    %cst_9 = arith.constant 0.000000e+00 : f32
    %12 = vector.broadcast %cst_9 : f32 to vector<2x32xf32>
    %cst_10 = arith.constant dense<0.000000e+00> : vector<2x96xf32>
    %13 = tpu.matmul %12, %1, %cst_10 {dimension_numbers = #tpu.dot_dimension_numbers<[1], [0], [0], [1], [0, 0, 1, 1], [], []>} : vector<2x32xf32>, vector<32x96xf32>, vector<2x96xf32> -> vector<2x96xf32>
    %14 = vector.extract_strided_slice %11 {offsets = [0, 0, 0], sizes = [2, 1, 96], strides = [1, 1, 1]} : vector<2x16x96xf32> to vector<2x1x96xf32>
    %15 = vector.shape_cast %14 : vector<2x1x96xf32> to vector<2x96xf32>
    %16 = vector.extract_strided_slice %15 {offsets = [0, 0], sizes = [2, 32], strides = [1, 1]} : vector<2x96xf32> to vector<2x32xf32>
    %17 = vector.extract_strided_slice %13 {offsets = [0, 0], sizes = [2, 32], strides = [1, 1]} : vector<2x96xf32> to vector<2x32xf32>
    %18 = arith.addf %16, %17 : vector<2x32xf32>
    %19 = arith.negf %18 : vector<2x32xf32>
    %20 = math.exp %19 : vector<2x32xf32>
    %cst_11 = arith.constant 1.000000e+00 : f32
    %21 = vector.broadcast %cst_11 : f32 to vector<2x32xf32>
    %22 = arith.addf %21, %20 : vector<2x32xf32>
    %23 = arith.divf %21, %22 : vector<2x32xf32>
    %24 = vector.extract_strided_slice %15 {offsets = [0, 32], sizes = [2, 32], strides = [1, 1]} : vector<2x96xf32> to vector<2x32xf32>
    %25 = vector.extract_strided_slice %13 {offsets = [0, 32], sizes = [2, 32], strides = [1, 1]} : vector<2x96xf32> to vector<2x32xf32>
    %26 = arith.addf %24, %25 : vector<2x32xf32>
    %27 = arith.negf %26 : vector<2x32xf32>
    %28 = math.exp %27 : vector<2x32xf32>
    %cst_12 = arith.constant 1.000000e+00 : f32
    %29 = vector.broadcast %cst_12 : f32 to vector<2x32xf32>
    %30 = arith.addf %29, %28 : vector<2x32xf32>
    %31 = arith.divf %29, %30 : vector<2x32xf32>
    %32 = vector.extract_strided_slice %15 {offsets = [0, 64], sizes = [2, 32], strides = [1, 1]} : vector<2x96xf32> to vector<2x32xf32>
    %33 = vector.extract_strided_slice %13 {offsets = [0, 64], sizes = [2, 32], strides = [1, 1]} : vector<2x96xf32> to vector<2x32xf32>
    %34 = vector.broadcast %4 : vector<1x32xf32> to vector<2x32xf32>
    %35 = arith.addf %33, %34 : vector<2x32xf32>
    %36 = arith.mulf %23, %35 : vector<2x32xf32>
    %37 = arith.addf %32, %36 : vector<2x32xf32>
    %38 = math.tanh %37 : vector<2x32xf32>
    %39 = arith.subf %12, %38 : vector<2x32xf32>
    %40 = arith.mulf %31, %39 : vector<2x32xf32>
    %41 = arith.addf %38, %40 : vector<2x32xf32>
    %42 = vector.shape_cast %41 : vector<2x32xf32> to vector<2x1x32xf32>
    %c0_13 = arith.constant 0 : index
    %c0_14 = arith.constant 0 : index
    %c0_15 = arith.constant 0 : index
    %43 = vector.load %arg3[%c0_13, %c0_14, %c0_15] : memref<2x16x32xf32, #tpu.memory_space<vmem>>, vector<2x1x32xf32>
    tpu.vector_store %arg3[%c0_13, %c0_14, %c0_15], %42 {strides = array<i32>} : memref<2x16x32xf32, #tpu.memory_space<vmem>>, vector<2x1x32xf32>,
    %cst_16 = arith.constant dense<0.000000e+00> : vector<2x96xf32>
    %44 = tpu.matmul %41, %1, %cst_16 {dimension_numbers = #tpu.dot_dimension_numbers<[1], [0], [0], [1], [0, 0, 1, 1], [], []>} : vector<2x32xf32>, vector<32x96xf32>, vector<2x96xf32> -> vector<2x96xf32>
    %45 = vector.extract_strided_slice %11 {offsets = [0, 1, 0], sizes = [2, 1, 96], strides = [1, 1, 1]} : vector<2x16x96xf32> to vector<2x1x96xf32>
    %46 = vector.shape_cast %45 : vector<2x1x96xf32> to vector<2x96xf32>
    %47 = vector.extract_strided_slice %46 {offsets = [0, 0], sizes = [2, 32], strides = [1, 1]} : vector<2x96xf32> to vector<2x32xf32>
    %48 = vector.extract_strided_slice %44 {offsets = [0, 0], sizes = [2, 32], strides = [1, 1]} : vector<2x96xf32> to vector<2x32xf32>
    %49 = arith.addf %47, %48 : vector<2x32xf32>
    %50 = arith.negf %49 : vector<2x32xf32>
    %51 = math.exp %50 : vector<2x32xf32>
    %cst_17 = arith.constant 1.000000e+00 : f32
    %52 = vector.broadcast %cst_17 : f32 to vector<2x32xf32>
    %53 = arith.addf %52, %51 : vector<2x32xf32>
    %54 = arith.divf %52, %53 : vector<2x32xf32>
    %55 = vector.extract_strided_slice %46 {offsets = [0, 32], sizes = [2, 32], strides = [1, 1]} : vector<2x96xf32> to vector<2x32xf32>
    %56 = vector.extract_strided_slice %44 {offsets = [0, 32], sizes = [2, 32], strides = [1, 1]} : vector<2x96xf32> to vector<2x32xf32>
    %57 = arith.addf %55, %56 : vector<2x32xf32>
    %58 = arith.negf %57 : vector<2x32xf32>
    %59 = math.exp %58 : vector<2x32xf32>
    %cst_18 = arith.constant 1.000000e+00 : f32
    %60 = vector.broadcast %cst_18 : f32 to vector<2x32xf32>
    %61 = arith.addf %60, %59 : vector<2x32xf32>
    %62 = arith.divf %60, %61 : vector<2x32xf32>
    %63 = vector.extract_strided_slice %46 {offsets = [0, 64], sizes = [2, 32], strides = [1, 1]} : vector<2x96xf32> to vector<2x32xf32>
    %64 = vector.extract_strided_slice %44 {offsets = [0, 64], sizes = [2, 32], strides = [1, 1]} : vector<2x96xf32> to vector<2x32xf32>
    %65 = vector.broadcast %4 : vector<1x32xf32> to vector<2x32xf32>
    %66 = arith.addf %64, %65 : vector<2x32xf32>
    %67 = arith.mulf %54, %66 : vector<2x32xf32>
    %68 = arith.addf %63, %67 : vector<2x32xf32>
    %69 = math.tanh %68 : vector<2x32xf32>
    %70 = arith.subf %41, %69 : vector<2x32xf32>
    %71 = arith.mulf %62, %70 : vector<2x32xf32>
    %72 = arith.addf %69, %71 : vector<2x32xf32>
    %73 = vector.shape_cast %72 : vector<2x32xf32> to vector<2x1x32xf32>
    %c0_19 = arith.constant 0 : index
    %c1 = arith.constant 1 : index
    %c0_20 = arith.constant 0 : index
    %74 = vector.load %arg3[%c0_19, %c1, %c0_20] : memref<2x16x32xf32, #tpu.memory_space<vmem>>, vector<2x1x32xf32>
    tpu.vector_store %arg3[%c0_19, %c1, %c0_20], %73 {strides = array<i32>} : memref<2x16x32xf32, #tpu.memory_space<vmem>>, vector<2x1x32xf32>,
    %cst_21 = arith.constant dense<0.000000e+00> : vector<2x96xf32>
    %75 = tpu.matmul %72, %1, %cst_21 {dimension_numbers = #tpu.dot_dimension_numbers<[1], [0], [0], [1], [0, 0, 1, 1], [], []>} : vector<2x32xf32>, vector<32x96xf32>, vector<2x96xf32> -> vector<2x96xf32>
    %76 = vector.extract_strided_slice %11 {offsets = [0, 2, 0], sizes = [2, 1, 96], strides = [1, 1, 1]} : vector<2x16x96xf32> to vector<2x1x96xf32>
    %77 = vector.shape_cast %76 : vector<2x1x96xf32> to vector<2x96xf32>
    %78 = vector.extract_strided_slice %77 {offsets = [0, 0], sizes = [2, 32], strides = [1, 1]} : vector<2x96xf32> to vector<2x32xf32>
    %79 = vector.extract_strided_slice %75 {offsets = [0, 0], sizes = [2, 32], strides = [1, 1]} : vector<2x96xf32> to vector<2x32xf32>
    %80 = arith.addf %78, %79 : vector<2x32xf32>
    %81 = arith.negf %80 : vector<2x32xf32>
    %82 = math.exp %81 : vector<2x32xf32>
    %cst_22 = arith.constant 1.000000e+00 : f32
    %83 = vector.broadcast %cst_22 : f32 to vector<2x32xf32>
    %84 = arith.addf %83, %82 : vector<2x32xf32>
    %85 = arith.divf %83, %84 : vector<2x32xf32>
    %86 = vector.extract_strided_slice %77 {offsets = [0, 32], sizes = [2, 32], strides = [1, 1]} : vector<2x96xf32> to vector<2x32xf32>
    %87 = vector.extract_strided_slice %75 {offsets = [0, 32], sizes = [2, 32], strides = [1, 1]} : vector<2x96xf32> to vector<2x32xf32>
    %88 = arith.addf %86, %87 : vector<2x32xf32>
    %89 = arith.negf %88 : vector<2x32xf32>
    %90 = math.exp %89 : vector<2x32xf32>
    %cst_23 = arith.constant 1.000000e+00 : f32
    %91 = vector.broadcast %cst_23 : f32 to vector<2x32xf32>
    %92 = arith.addf %91, %90 : vector<2x32xf32>
    %93 = arith.divf %91, %92 : vector<2x32xf32>
    %94 = vector.extract_strided_slice %77 {offsets = [0, 64], sizes = [2, 32], strides = [1, 1]} : vector<2x96xf32> to vector<2x32xf32>
    %95 = vector.extract_strided_slice %75 {offsets = [0, 64], sizes = [2, 32], strides = [1, 1]} : vector<2x96xf32> to vector<2x32xf32>
    %96 = vector.broadcast %4 : vector<1x32xf32> to vector<2x32xf32>
    %97 = arith.addf %95, %96 : vector<2x32xf32>
    %98 = arith.mulf %85, %97 : vector<2x32xf32>
    %99 = arith.addf %94, %98 : vector<2x32xf32>
    %100 = math.tanh %99 : vector<2x32xf32>
    %101 = arith.subf %72, %100 : vector<2x32xf32>
    %102 = arith.mulf %93, %101 : vector<2x32xf32>
    %103 = arith.addf %100, %102 : vector<2x32xf32>
    %104 = vector.shape_cast %103 : vector<2x32xf32> to vector<2x1x32xf32>
    %c0_24 = arith.constant 0 : index
    %c2 = arith.constant 2 : index
    %c0_25 = arith.constant 0 : index
    %105 = vector.load %arg3[%c0_24, %c2, %c0_25] : memref<2x16x32xf32, #tpu.memory_space<vmem>>, vector<2x1x32xf32>
    tpu.vector_store %arg3[%c0_24, %c2, %c0_25], %104 {strides = array<i32>} : memref<2x16x32xf32, #tpu.memory_space<vmem>>, vector<2x1x32xf32>,
    %cst_26 = arith.constant dense<0.000000e+00> : vector<2x96xf32>
    %106 = tpu.matmul %103, %1, %cst_26 {dimension_numbers = #tpu.dot_dimension_numbers<[1], [0], [0], [1], [0, 0, 1, 1], [], []>} : vector<2x32xf32>, vector<32x96xf32>, vector<2x96xf32> -> vector<2x96xf32>
    %107 = vector.extract_strided_slice %11 {offsets = [0, 3, 0], sizes = [2, 1, 96], strides = [1, 1, 1]} : vector<2x16x96xf32> to vector<2x1x96xf32>
    %108 = vector.shape_cast %107 : vector<2x1x96xf32> to vector<2x96xf32>
    %109 = vector.extract_strided_slice %108 {offsets = [0, 0], sizes = [2, 32], strides = [1, 1]} : vector<2x96xf32> to vector<2x32xf32>
    %110 = vector.extract_strided_slice %106 {offsets = [0, 0], sizes = [2, 32], strides = [1, 1]} : vector<2x96xf32> to vector<2x32xf32>
    %111 = arith.addf %109, %110 : vector<2x32xf32>
    %112 = arith.negf %111 : vector<2x32xf32>
    %113 = math.exp %112 : vector<2x32xf32>
    %cst_27 = arith.constant 1.000000e+00 : f32
    %114 = vector.broadcast %cst_27 : f32 to vector<2x32xf32>
    %115 = arith.addf %114, %113 : vector<2x32xf32>
    %116 = arith.divf %114, %115 : vector<2x32xf32>
    %117 = vector.extract_strided_slice %108 {offsets = [0, 32], sizes = [2, 32], strides = [1, 1]} : vector<2x96xf32> to vector<2x32xf32>
    %118 = vector.extract_strided_slice %106 {offsets = [0, 32], sizes = [2, 32], strides = [1, 1]} : vector<2x96xf32> to vector<2x32xf32>
    %119 = arith.addf %117, %118 : vector<2x32xf32>
    %120 = arith.negf %119 : vector<2x32xf32>
    %121 = math.exp %120 : vector<2x32xf32>
    %cst_28 = arith.constant 1.000000e+00 : f32
    %122 = vector.broadcast %cst_28 : f32 to vector<2x32xf32>
    %123 = arith.addf %122, %121 : vector<2x32xf32>
    %124 = arith.divf %122, %123 : vector<2x32xf32>
    %125 = vector.extract_strided_slice %108 {offsets = [0, 64], sizes = [2, 32], strides = [1, 1]} : vector<2x96xf32> to vector<2x32xf32>
    %126 = vector.extract_strided_slice %106 {offsets = [0, 64], sizes = [2, 32], strides = [1, 1]} : vector<2x96xf32> to vector<2x32xf32>
    %127 = vector.broadcast %4 : vector<1x32xf32> to vector<2x32xf32>
    %128 = arith.addf %126, %127 : vector<2x32xf32>
    %129 = arith.mulf %116, %128 : vector<2x32xf32>
    %130 = arith.addf %125, %129 : vector<2x32xf32>
    %131 = math.tanh %130 : vector<2x32xf32>
    %132 = arith.subf %103, %131 : vector<2x32xf32>
    %133 = arith.mulf %124, %132 : vector<2x32xf32>
    %134 = arith.addf %131, %133 : vector<2x32xf32>
    %135 = vector.shape_cast %134 : vector<2x32xf32> to vector<2x1x32xf32>
    %c0_29 = arith.constant 0 : index
    %c3 = arith.constant 3 : index
    %c0_30 = arith.constant 0 : index
    %136 = vector.load %arg3[%c0_29, %c3, %c0_30] : memref<2x16x32xf32, #tpu.memory_space<vmem>>, vector<2x1x32xf32>
    tpu.vector_store %arg3[%c0_29, %c3, %c0_30], %135 {strides = array<i32>} : memref<2x16x32xf32, #tpu.memory_space<vmem>>, vector<2x1x32xf32>,
    %cst_31 = arith.constant dense<0.000000e+00> : vector<2x96xf32>
    %137 = tpu.matmul %134, %1, %cst_31 {dimension_numbers = #tpu.dot_dimension_numbers<[1], [0], [0], [1], [0, 0, 1, 1], [], []>} : vector<2x32xf32>, vector<32x96xf32>, vector<2x96xf32> -> vector<2x96xf32>
    %138 = vector.extract_strided_slice %11 {offsets = [0, 4, 0], sizes = [2, 1, 96], strides = [1, 1, 1]} : vector<2x16x96xf32> to vector<2x1x96xf32>
    %139 = vector.shape_cast %138 : vector<2x1x96xf32> to vector<2x96xf32>
    %140 = vector.extract_strided_slice %139 {offsets = [0, 0], sizes = [2, 32], strides = [1, 1]} : vector<2x96xf32> to vector<2x32xf32>
    %141 = vector.extract_strided_slice %137 {offsets = [0, 0], sizes = [2, 32], strides = [1, 1]} : vector<2x96xf32> to vector<2x32xf32>
    %142 = arith.addf %140, %141 : vector<2x32xf32>
    %143 = arith.negf %142 : vector<2x32xf32>
    %144 = math.exp %143 : vector<2x32xf32>
    %cst_32 = arith.constant 1.000000e+00 : f32
    %145 = vector.broadcast %cst_32 : f32 to vector<2x32xf32>
    %146 = arith.addf %145, %144 : vector<2x32xf32>
    %147 = arith.divf %145, %146 : vector<2x32xf32>
    %148 = vector.extract_strided_slice %139 {offsets = [0, 32], sizes = [2, 32], strides = [1, 1]} : vector<2x96xf32> to vector<2x32xf32>
    %149 = vector.extract_strided_slice %137 {offsets = [0, 32], sizes = [2, 32], strides = [1, 1]} : vector<2x96xf32> to vector<2x32xf32>
    %150 = arith.addf %148, %149 : vector<2x32xf32>
    %151 = arith.negf %150 : vector<2x32xf32>
    %152 = math.exp %151 : vector<2x32xf32>
    %cst_33 = arith.constant 1.000000e+00 : f32
    %153 = vector.broadcast %cst_33 : f32 to vector<2x32xf32>
    %154 = arith.addf %153, %152 : vector<2x32xf32>
    %155 = arith.divf %153, %154 : vector<2x32xf32>
    %156 = vector.extract_strided_slice %139 {offsets = [0, 64], sizes = [2, 32], strides = [1, 1]} : vector<2x96xf32> to vector<2x32xf32>
    %157 = vector.extract_strided_slice %137 {offsets = [0, 64], sizes = [2, 32], strides = [1, 1]} : vector<2x96xf32> to vector<2x32xf32>
    %158 = vector.broadcast %4 : vector<1x32xf32> to vector<2x32xf32>
    %159 = arith.addf %157, %158 : vector<2x32xf32>
    %160 = arith.mulf %147, %159 : vector<2x32xf32>
    %161 = arith.addf %156, %160 : vector<2x32xf32>
    %162 = math.tanh %161 : vector<2x32xf32>
    %163 = arith.subf %134, %162 : vector<2x32xf32>
    %164 = arith.mulf %155, %163 : vector<2x32xf32>
    %165 = arith.addf %162, %164 : vector<2x32xf32>
    %166 = vector.shape_cast %165 : vector<2x32xf32> to vector<2x1x32xf32>
    %c0_34 = arith.constant 0 : index
    %c4 = arith.constant 4 : index
    %c0_35 = arith.constant 0 : index
    %167 = vector.load %arg3[%c0_34, %c4, %c0_35] : memref<2x16x32xf32, #tpu.memory_space<vmem>>, vector<2x1x32xf32>
    tpu.vector_store %arg3[%c0_34, %c4, %c0_35], %166 {strides = array<i32>} : memref<2x16x32xf32, #tpu.memory_space<vmem>>, vector<2x1x32xf32>,
    %cst_36 = arith.constant dense<0.000000e+00> : vector<2x96xf32>
    %168 = tpu.matmul %165, %1, %cst_36 {dimension_numbers = #tpu.dot_dimension_numbers<[1], [0], [0], [1], [0, 0, 1, 1], [], []>} : vector<2x32xf32>, vector<32x96xf32>, vector<2x96xf32> -> vector<2x96xf32>
    %169 = vector.extract_strided_slice %11 {offsets = [0, 5, 0], sizes = [2, 1, 96], strides = [1, 1, 1]} : vector<2x16x96xf32> to vector<2x1x96xf32>
    %170 = vector.shape_cast %169 : vector<2x1x96xf32> to vector<2x96xf32>
    %171 = vector.extract_strided_slice %170 {offsets = [0, 0], sizes = [2, 32], strides = [1, 1]} : vector<2x96xf32> to vector<2x32xf32>
    %172 = vector.extract_strided_slice %168 {offsets = [0, 0], sizes = [2, 32], strides = [1, 1]} : vector<2x96xf32> to vector<2x32xf32>
    %173 = arith.addf %171, %172 : vector<2x32xf32>
    %174 = arith.negf %173 : vector<2x32xf32>
    %175 = math.exp %174 : vector<2x32xf32>
    %cst_37 = arith.constant 1.000000e+00 : f32
    %176 = vector.broadcast %cst_37 : f32 to vector<2x32xf32>
    %177 = arith.addf %176, %175 : vector<2x32xf32>
    %178 = arith.divf %176, %177 : vector<2x32xf32>
    %179 = vector.extract_strided_slice %170 {offsets = [0, 32], sizes = [2, 32], strides = [1, 1]} : vector<2x96xf32> to vector<2x32xf32>
    %180 = vector.extract_strided_slice %168 {offsets = [0, 32], sizes = [2, 32], strides = [1, 1]} : vector<2x96xf32> to vector<2x32xf32>
    %181 = arith.addf %179, %180 : vector<2x32xf32>
    %182 = arith.negf %181 : vector<2x32xf32>
    %183 = math.exp %182 : vector<2x32xf32>
    %cst_38 = arith.constant 1.000000e+00 : f32
    %184 = vector.broadcast %cst_38 : f32 to vector<2x32xf32>
    %185 = arith.addf %184, %183 : vector<2x32xf32>
    %186 = arith.divf %184, %185 : vector<2x32xf32>
    %187 = vector.extract_strided_slice %170 {offsets = [0, 64], sizes = [2, 32], strides = [1, 1]} : vector<2x96xf32> to vector<2x32xf32>
    %188 = vector.extract_strided_slice %168 {offsets = [0, 64], sizes = [2, 32], strides = [1, 1]} : vector<2x96xf32> to vector<2x32xf32>
    %189 = vector.broadcast %4 : vector<1x32xf32> to vector<2x32xf32>
    %190 = arith.addf %188, %189 : vector<2x32xf32>
    %191 = arith.mulf %178, %190 : vector<2x32xf32>
    %192 = arith.addf %187, %191 : vector<2x32xf32>
    %193 = math.tanh %192 : vector<2x32xf32>
    %194 = arith.subf %165, %193 : vector<2x32xf32>
    %195 = arith.mulf %186, %194 : vector<2x32xf32>
    %196 = arith.addf %193, %195 : vector<2x32xf32>
    %197 = vector.shape_cast %196 : vector<2x32xf32> to vector<2x1x32xf32>
    %c0_39 = arith.constant 0 : index
    %c5 = arith.constant 5 : index
    %c0_40 = arith.constant 0 : index
    %198 = vector.load %arg3[%c0_39, %c5, %c0_40] : memref<2x16x32xf32, #tpu.memory_space<vmem>>, vector<2x1x32xf32>
    tpu.vector_store %arg3[%c0_39, %c5, %c0_40], %197 {strides = array<i32>} : memref<2x16x32xf32, #tpu.memory_space<vmem>>, vector<2x1x32xf32>,
    %cst_41 = arith.constant dense<0.000000e+00> : vector<2x96xf32>
    %199 = tpu.matmul %196, %1, %cst_41 {dimension_numbers = #tpu.dot_dimension_numbers<[1], [0], [0], [1], [0, 0, 1, 1], [], []>} : vector<2x32xf32>, vector<32x96xf32>, vector<2x96xf32> -> vector<2x96xf32>
    %200 = vector.extract_strided_slice %11 {offsets = [0, 6, 0], sizes = [2, 1, 96], strides = [1, 1, 1]} : vector<2x16x96xf32> to vector<2x1x96xf32>
    %201 = vector.shape_cast %200 : vector<2x1x96xf32> to vector<2x96xf32>
    %202 = vector.extract_strided_slice %201 {offsets = [0, 0], sizes = [2, 32], strides = [1, 1]} : vector<2x96xf32> to vector<2x32xf32>
    %203 = vector.extract_strided_slice %199 {offsets = [0, 0], sizes = [2, 32], strides = [1, 1]} : vector<2x96xf32> to vector<2x32xf32>
    %204 = arith.addf %202, %203 : vector<2x32xf32>
    %205 = arith.negf %204 : vector<2x32xf32>
    %206 = math.exp %205 : vector<2x32xf32>
    %cst_42 = arith.constant 1.000000e+00 : f32
    %207 = vector.broadcast %cst_42 : f32 to vector<2x32xf32>
    %208 = arith.addf %207, %206 : vector<2x32xf32>
    %209 = arith.divf %207, %208 : vector<2x32xf32>
    %210 = vector.extract_strided_slice %201 {offsets = [0, 32], sizes = [2, 32], strides = [1, 1]} : vector<2x96xf32> to vector<2x32xf32>
    %211 = vector.extract_strided_slice %199 {offsets = [0, 32], sizes = [2, 32], strides = [1, 1]} : vector<2x96xf32> to vector<2x32xf32>
    %212 = arith.addf %210, %211 : vector<2x32xf32>
    %213 = arith.negf %212 : vector<2x32xf32>
    %214 = math.exp %213 : vector<2x32xf32>
    %cst_43 = arith.constant 1.000000e+00 : f32
    %215 = vector.broadcast %cst_43 : f32 to vector<2x32xf32>
    %216 = arith.addf %215, %214 : vector<2x32xf32>
    %217 = arith.divf %215, %216 : vector<2x32xf32>
    %218 = vector.extract_strided_slice %201 {offsets = [0, 64], sizes = [2, 32], strides = [1, 1]} : vector<2x96xf32> to vector<2x32xf32>
    %219 = vector.extract_strided_slice %199 {offsets = [0, 64], sizes = [2, 32], strides = [1, 1]} : vector<2x96xf32> to vector<2x32xf32>
    %220 = vector.broadcast %4 : vector<1x32xf32> to vector<2x32xf32>
    %221 = arith.addf %219, %220 : vector<2x32xf32>
    %222 = arith.mulf %209, %221 : vector<2x32xf32>
    %223 = arith.addf %218, %222 : vector<2x32xf32>
    %224 = math.tanh %223 : vector<2x32xf32>
    %225 = arith.subf %196, %224 : vector<2x32xf32>
    %226 = arith.mulf %217, %225 : vector<2x32xf32>
    %227 = arith.addf %224, %226 : vector<2x32xf32>
    %228 = vector.shape_cast %227 : vector<2x32xf32> to vector<2x1x32xf32>
    %c0_44 = arith.constant 0 : index
    %c6 = arith.constant 6 : index
    %c0_45 = arith.constant 0 : index
    %229 = vector.load %arg3[%c0_44, %c6, %c0_45] : memref<2x16x32xf32, #tpu.memory_space<vmem>>, vector<2x1x32xf32>
    tpu.vector_store %arg3[%c0_44, %c6, %c0_45], %228 {strides = array<i32>} : memref<2x16x32xf32, #tpu.memory_space<vmem>>, vector<2x1x32xf32>,
    %cst_46 = arith.constant dense<0.000000e+00> : vector<2x96xf32>
    %230 = tpu.matmul %227, %1, %cst_46 {dimension_numbers = #tpu.dot_dimension_numbers<[1], [0], [0], [1], [0, 0, 1, 1], [], []>} : vector<2x32xf32>, vector<32x96xf32>, vector<2x96xf32> -> vector<2x96xf32>
    %231 = vector.extract_strided_slice %11 {offsets = [0, 7, 0], sizes = [2, 1, 96], strides = [1, 1, 1]} : vector<2x16x96xf32> to vector<2x1x96xf32>
    %232 = vector.shape_cast %231 : vector<2x1x96xf32> to vector<2x96xf32>
    %233 = vector.extract_strided_slice %232 {offsets = [0, 0], sizes = [2, 32], strides = [1, 1]} : vector<2x96xf32> to vector<2x32xf32>
    %234 = vector.extract_strided_slice %230 {offsets = [0, 0], sizes = [2, 32], strides = [1, 1]} : vector<2x96xf32> to vector<2x32xf32>
    %235 = arith.addf %233, %234 : vector<2x32xf32>
    %236 = arith.negf %235 : vector<2x32xf32>
    %237 = math.exp %236 : vector<2x32xf32>
    %cst_47 = arith.constant 1.000000e+00 : f32
    %238 = vector.broadcast %cst_47 : f32 to vector<2x32xf32>
    %239 = arith.addf %238, %237 : vector<2x32xf32>
    %240 = arith.divf %238, %239 : vector<2x32xf32>
    %241 = vector.extract_strided_slice %232 {offsets = [0, 32], sizes = [2, 32], strides = [1, 1]} : vector<2x96xf32> to vector<2x32xf32>
    %242 = vector.extract_strided_slice %230 {offsets = [0, 32], sizes = [2, 32], strides = [1, 1]} : vector<2x96xf32> to vector<2x32xf32>
    %243 = arith.addf %241, %242 : vector<2x32xf32>
    %244 = arith.negf %243 : vector<2x32xf32>
    %245 = math.exp %244 : vector<2x32xf32>
    %cst_48 = arith.constant 1.000000e+00 : f32
    %246 = vector.broadcast %cst_48 : f32 to vector<2x32xf32>
    %247 = arith.addf %246, %245 : vector<2x32xf32>
    %248 = arith.divf %246, %247 : vector<2x32xf32>
    %249 = vector.extract_strided_slice %232 {offsets = [0, 64], sizes = [2, 32], strides = [1, 1]} : vector<2x96xf32> to vector<2x32xf32>
    %250 = vector.extract_strided_slice %230 {offsets = [0, 64], sizes = [2, 32], strides = [1, 1]} : vector<2x96xf32> to vector<2x32xf32>
    %251 = vector.broadcast %4 : vector<1x32xf32> to vector<2x32xf32>
    %252 = arith.addf %250, %251 : vector<2x32xf32>
    %253 = arith.mulf %240, %252 : vector<2x32xf32>
    %254 = arith.addf %249, %253 : vector<2x32xf32>
    %255 = math.tanh %254 : vector<2x32xf32>
    %256 = arith.subf %227, %255 : vector<2x32xf32>
    %257 = arith.mulf %248, %256 : vector<2x32xf32>
    %258 = arith.addf %255, %257 : vector<2x32xf32>
    %259 = vector.shape_cast %258 : vector<2x32xf32> to vector<2x1x32xf32>
    %c0_49 = arith.constant 0 : index
    %c7 = arith.constant 7 : index
    %c0_50 = arith.constant 0 : index
    %260 = vector.load %arg3[%c0_49, %c7, %c0_50] : memref<2x16x32xf32, #tpu.memory_space<vmem>>, vector<2x1x32xf32>
    tpu.vector_store %arg3[%c0_49, %c7, %c0_50], %259 {strides = array<i32>} : memref<2x16x32xf32, #tpu.memory_space<vmem>>, vector<2x1x32xf32>,
    %cst_51 = arith.constant dense<0.000000e+00> : vector<2x96xf32>
    %261 = tpu.matmul %258, %1, %cst_51 {dimension_numbers = #tpu.dot_dimension_numbers<[1], [0], [0], [1], [0, 0, 1, 1], [], []>} : vector<2x32xf32>, vector<32x96xf32>, vector<2x96xf32> -> vector<2x96xf32>
    %262 = vector.extract_strided_slice %11 {offsets = [0, 8, 0], sizes = [2, 1, 96], strides = [1, 1, 1]} : vector<2x16x96xf32> to vector<2x1x96xf32>
    %263 = vector.shape_cast %262 : vector<2x1x96xf32> to vector<2x96xf32>
    %264 = vector.extract_strided_slice %263 {offsets = [0, 0], sizes = [2, 32], strides = [1, 1]} : vector<2x96xf32> to vector<2x32xf32>
    %265 = vector.extract_strided_slice %261 {offsets = [0, 0], sizes = [2, 32], strides = [1, 1]} : vector<2x96xf32> to vector<2x32xf32>
    %266 = arith.addf %264, %265 : vector<2x32xf32>
    %267 = arith.negf %266 : vector<2x32xf32>
    %268 = math.exp %267 : vector<2x32xf32>
    %cst_52 = arith.constant 1.000000e+00 : f32
    %269 = vector.broadcast %cst_52 : f32 to vector<2x32xf32>
    %270 = arith.addf %269, %268 : vector<2x32xf32>
    %271 = arith.divf %269, %270 : vector<2x32xf32>
    %272 = vector.extract_strided_slice %263 {offsets = [0, 32], sizes = [2, 32], strides = [1, 1]} : vector<2x96xf32> to vector<2x32xf32>
    %273 = vector.extract_strided_slice %261 {offsets = [0, 32], sizes = [2, 32], strides = [1, 1]} : vector<2x96xf32> to vector<2x32xf32>
    %274 = arith.addf %272, %273 : vector<2x32xf32>
    %275 = arith.negf %274 : vector<2x32xf32>
    %276 = math.exp %275 : vector<2x32xf32>
    %cst_53 = arith.constant 1.000000e+00 : f32
    %277 = vector.broadcast %cst_53 : f32 to vector<2x32xf32>
    %278 = arith.addf %277, %276 : vector<2x32xf32>
    %279 = arith.divf %277, %278 : vector<2x32xf32>
    %280 = vector.extract_strided_slice %263 {offsets = [0, 64], sizes = [2, 32], strides = [1, 1]} : vector<2x96xf32> to vector<2x32xf32>
    %281 = vector.extract_strided_slice %261 {offsets = [0, 64], sizes = [2, 32], strides = [1, 1]} : vector<2x96xf32> to vector<2x32xf32>
    %282 = vector.broadcast %4 : vector<1x32xf32> to vector<2x32xf32>
    %283 = arith.addf %281, %282 : vector<2x32xf32>
    %284 = arith.mulf %271, %283 : vector<2x32xf32>
    %285 = arith.addf %280, %284 : vector<2x32xf32>
    %286 = math.tanh %285 : vector<2x32xf32>
    %287 = arith.subf %258, %286 : vector<2x32xf32>
    %288 = arith.mulf %279, %287 : vector<2x32xf32>
    %289 = arith.addf %286, %288 : vector<2x32xf32>
    %290 = vector.shape_cast %289 : vector<2x32xf32> to vector<2x1x32xf32>
    %c0_54 = arith.constant 0 : index
    %c8 = arith.constant 8 : index
    %c0_55 = arith.constant 0 : index
    %291 = vector.load %arg3[%c0_54, %c8, %c0_55] : memref<2x16x32xf32, #tpu.memory_space<vmem>>, vector<2x1x32xf32>
    tpu.vector_store %arg3[%c0_54, %c8, %c0_55], %290 {strides = array<i32>} : memref<2x16x32xf32, #tpu.memory_space<vmem>>, vector<2x1x32xf32>,
    %cst_56 = arith.constant dense<0.000000e+00> : vector<2x96xf32>
    %292 = tpu.matmul %289, %1, %cst_56 {dimension_numbers = #tpu.dot_dimension_numbers<[1], [0], [0], [1], [0, 0, 1, 1], [], []>} : vector<2x32xf32>, vector<32x96xf32>, vector<2x96xf32> -> vector<2x96xf32>
    %293 = vector.extract_strided_slice %11 {offsets = [0, 9, 0], sizes = [2, 1, 96], strides = [1, 1, 1]} : vector<2x16x96xf32> to vector<2x1x96xf32>
    %294 = vector.shape_cast %293 : vector<2x1x96xf32> to vector<2x96xf32>
    %295 = vector.extract_strided_slice %294 {offsets = [0, 0], sizes = [2, 32], strides = [1, 1]} : vector<2x96xf32> to vector<2x32xf32>
    %296 = vector.extract_strided_slice %292 {offsets = [0, 0], sizes = [2, 32], strides = [1, 1]} : vector<2x96xf32> to vector<2x32xf32>
    %297 = arith.addf %295, %296 : vector<2x32xf32>
    %298 = arith.negf %297 : vector<2x32xf32>
    %299 = math.exp %298 : vector<2x32xf32>
    %cst_57 = arith.constant 1.000000e+00 : f32
    %300 = vector.broadcast %cst_57 : f32 to vector<2x32xf32>
    %301 = arith.addf %300, %299 : vector<2x32xf32>
    %302 = arith.divf %300, %301 : vector<2x32xf32>
    %303 = vector.extract_strided_slice %294 {offsets = [0, 32], sizes = [2, 32], strides = [1, 1]} : vector<2x96xf32> to vector<2x32xf32>
    %304 = vector.extract_strided_slice %292 {offsets = [0, 32], sizes = [2, 32], strides = [1, 1]} : vector<2x96xf32> to vector<2x32xf32>
    %305 = arith.addf %303, %304 : vector<2x32xf32>
    %306 = arith.negf %305 : vector<2x32xf32>
    %307 = math.exp %306 : vector<2x32xf32>
    %cst_58 = arith.constant 1.000000e+00 : f32
    %308 = vector.broadcast %cst_58 : f32 to vector<2x32xf32>
    %309 = arith.addf %308, %307 : vector<2x32xf32>
    %310 = arith.divf %308, %309 : vector<2x32xf32>
    %311 = vector.extract_strided_slice %294 {offsets = [0, 64], sizes = [2, 32], strides = [1, 1]} : vector<2x96xf32> to vector<2x32xf32>
    %312 = vector.extract_strided_slice %292 {offsets = [0, 64], sizes = [2, 32], strides = [1, 1]} : vector<2x96xf32> to vector<2x32xf32>
    %313 = vector.broadcast %4 : vector<1x32xf32> to vector<2x32xf32>
    %314 = arith.addf %312, %313 : vector<2x32xf32>
    %315 = arith.mulf %302, %314 : vector<2x32xf32>
    %316 = arith.addf %311, %315 : vector<2x32xf32>
    %317 = math.tanh %316 : vector<2x32xf32>
    %318 = arith.subf %289, %317 : vector<2x32xf32>
    %319 = arith.mulf %310, %318 : vector<2x32xf32>
    %320 = arith.addf %317, %319 : vector<2x32xf32>
    %321 = vector.shape_cast %320 : vector<2x32xf32> to vector<2x1x32xf32>
    %c0_59 = arith.constant 0 : index
    %c9 = arith.constant 9 : index
    %c0_60 = arith.constant 0 : index
    %322 = vector.load %arg3[%c0_59, %c9, %c0_60] : memref<2x16x32xf32, #tpu.memory_space<vmem>>, vector<2x1x32xf32>
    tpu.vector_store %arg3[%c0_59, %c9, %c0_60], %321 {strides = array<i32>} : memref<2x16x32xf32, #tpu.memory_space<vmem>>, vector<2x1x32xf32>,
    %cst_61 = arith.constant dense<0.000000e+00> : vector<2x96xf32>
    %323 = tpu.matmul %320, %1, %cst_61 {dimension_numbers = #tpu.dot_dimension_numbers<[1], [0], [0], [1], [0, 0, 1, 1], [], []>} : vector<2x32xf32>, vector<32x96xf32>, vector<2x96xf32> -> vector<2x96xf32>
    %324 = vector.extract_strided_slice %11 {offsets = [0, 10, 0], sizes = [2, 1, 96], strides = [1, 1, 1]} : vector<2x16x96xf32> to vector<2x1x96xf32>
    %325 = vector.shape_cast %324 : vector<2x1x96xf32> to vector<2x96xf32>
    %326 = vector.extract_strided_slice %325 {offsets = [0, 0], sizes = [2, 32], strides = [1, 1]} : vector<2x96xf32> to vector<2x32xf32>
    %327 = vector.extract_strided_slice %323 {offsets = [0, 0], sizes = [2, 32], strides = [1, 1]} : vector<2x96xf32> to vector<2x32xf32>
    %328 = arith.addf %326, %327 : vector<2x32xf32>
    %329 = arith.negf %328 : vector<2x32xf32>
    %330 = math.exp %329 : vector<2x32xf32>
    %cst_62 = arith.constant 1.000000e+00 : f32
    %331 = vector.broadcast %cst_62 : f32 to vector<2x32xf32>
    %332 = arith.addf %331, %330 : vector<2x32xf32>
    %333 = arith.divf %331, %332 : vector<2x32xf32>
    %334 = vector.extract_strided_slice %325 {offsets = [0, 32], sizes = [2, 32], strides = [1, 1]} : vector<2x96xf32> to vector<2x32xf32>
    %335 = vector.extract_strided_slice %323 {offsets = [0, 32], sizes = [2, 32], strides = [1, 1]} : vector<2x96xf32> to vector<2x32xf32>
    %336 = arith.addf %334, %335 : vector<2x32xf32>
    %337 = arith.negf %336 : vector<2x32xf32>
    %338 = math.exp %337 : vector<2x32xf32>
    %cst_63 = arith.constant 1.000000e+00 : f32
    %339 = vector.broadcast %cst_63 : f32 to vector<2x32xf32>
    %340 = arith.addf %339, %338 : vector<2x32xf32>
    %341 = arith.divf %339, %340 : vector<2x32xf32>
    %342 = vector.extract_strided_slice %325 {offsets = [0, 64], sizes = [2, 32], strides = [1, 1]} : vector<2x96xf32> to vector<2x32xf32>
    %343 = vector.extract_strided_slice %323 {offsets = [0, 64], sizes = [2, 32], strides = [1, 1]} : vector<2x96xf32> to vector<2x32xf32>
    %344 = vector.broadcast %4 : vector<1x32xf32> to vector<2x32xf32>
    %345 = arith.addf %343, %344 : vector<2x32xf32>
    %346 = arith.mulf %333, %345 : vector<2x32xf32>
    %347 = arith.addf %342, %346 : vector<2x32xf32>
    %348 = math.tanh %347 : vector<2x32xf32>
    %349 = arith.subf %320, %348 : vector<2x32xf32>
    %350 = arith.mulf %341, %349 : vector<2x32xf32>
    %351 = arith.addf %348, %350 : vector<2x32xf32>
    %352 = vector.shape_cast %351 : vector<2x32xf32> to vector<2x1x32xf32>
    %c0_64 = arith.constant 0 : index
    %c10 = arith.constant 10 : index
    %c0_65 = arith.constant 0 : index
    %353 = vector.load %arg3[%c0_64, %c10, %c0_65] : memref<2x16x32xf32, #tpu.memory_space<vmem>>, vector<2x1x32xf32>
    tpu.vector_store %arg3[%c0_64, %c10, %c0_65], %352 {strides = array<i32>} : memref<2x16x32xf32, #tpu.memory_space<vmem>>, vector<2x1x32xf32>,
    %cst_66 = arith.constant dense<0.000000e+00> : vector<2x96xf32>
    %354 = tpu.matmul %351, %1, %cst_66 {dimension_numbers = #tpu.dot_dimension_numbers<[1], [0], [0], [1], [0, 0, 1, 1], [], []>} : vector<2x32xf32>, vector<32x96xf32>, vector<2x96xf32> -> vector<2x96xf32>
    %355 = vector.extract_strided_slice %11 {offsets = [0, 11, 0], sizes = [2, 1, 96], strides = [1, 1, 1]} : vector<2x16x96xf32> to vector<2x1x96xf32>
    %356 = vector.shape_cast %355 : vector<2x1x96xf32> to vector<2x96xf32>
    %357 = vector.extract_strided_slice %356 {offsets = [0, 0], sizes = [2, 32], strides = [1, 1]} : vector<2x96xf32> to vector<2x32xf32>
    %358 = vector.extract_strided_slice %354 {offsets = [0, 0], sizes = [2, 32], strides = [1, 1]} : vector<2x96xf32> to vector<2x32xf32>
    %359 = arith.addf %357, %358 : vector<2x32xf32>
    %360 = arith.negf %359 : vector<2x32xf32>
    %361 = math.exp %360 : vector<2x32xf32>
    %cst_67 = arith.constant 1.000000e+00 : f32
    %362 = vector.broadcast %cst_67 : f32 to vector<2x32xf32>
    %363 = arith.addf %362, %361 : vector<2x32xf32>
    %364 = arith.divf %362, %363 : vector<2x32xf32>
    %365 = vector.extract_strided_slice %356 {offsets = [0, 32], sizes = [2, 32], strides = [1, 1]} : vector<2x96xf32> to vector<2x32xf32>
    %366 = vector.extract_strided_slice %354 {offsets = [0, 32], sizes = [2, 32], strides = [1, 1]} : vector<2x96xf32> to vector<2x32xf32>
    %367 = arith.addf %365, %366 : vector<2x32xf32>
    %368 = arith.negf %367 : vector<2x32xf32>
    %369 = math.exp %368 : vector<2x32xf32>
    %cst_68 = arith.constant 1.000000e+00 : f32
    %370 = vector.broadcast %cst_68 : f32 to vector<2x32xf32>
    %371 = arith.addf %370, %369 : vector<2x32xf32>
    %372 = arith.divf %370, %371 : vector<2x32xf32>
    %373 = vector.extract_strided_slice %356 {offsets = [0, 64], sizes = [2, 32], strides = [1, 1]} : vector<2x96xf32> to vector<2x32xf32>
    %374 = vector.extract_strided_slice %354 {offsets = [0, 64], sizes = [2, 32], strides = [1, 1]} : vector<2x96xf32> to vector<2x32xf32>
    %375 = vector.broadcast %4 : vector<1x32xf32> to vector<2x32xf32>
    %376 = arith.addf %374, %375 : vector<2x32xf32>
    %377 = arith.mulf %364, %376 : vector<2x32xf32>
    %378 = arith.addf %373, %377 : vector<2x32xf32>
    %379 = math.tanh %378 : vector<2x32xf32>
    %380 = arith.subf %351, %379 : vector<2x32xf32>
    %381 = arith.mulf %372, %380 : vector<2x32xf32>
    %382 = arith.addf %379, %381 : vector<2x32xf32>
    %383 = vector.shape_cast %382 : vector<2x32xf32> to vector<2x1x32xf32>
    %c0_69 = arith.constant 0 : index
    %c11 = arith.constant 11 : index
    %c0_70 = arith.constant 0 : index
    %384 = vector.load %arg3[%c0_69, %c11, %c0_70] : memref<2x16x32xf32, #tpu.memory_space<vmem>>, vector<2x1x32xf32>
    tpu.vector_store %arg3[%c0_69, %c11, %c0_70], %383 {strides = array<i32>} : memref<2x16x32xf32, #tpu.memory_space<vmem>>, vector<2x1x32xf32>,
    %cst_71 = arith.constant dense<0.000000e+00> : vector<2x96xf32>
    %385 = tpu.matmul %382, %1, %cst_71 {dimension_numbers = #tpu.dot_dimension_numbers<[1], [0], [0], [1], [0, 0, 1, 1], [], []>} : vector<2x32xf32>, vector<32x96xf32>, vector<2x96xf32> -> vector<2x96xf32>
    %386 = vector.extract_strided_slice %11 {offsets = [0, 12, 0], sizes = [2, 1, 96], strides = [1, 1, 1]} : vector<2x16x96xf32> to vector<2x1x96xf32>
    %387 = vector.shape_cast %386 : vector<2x1x96xf32> to vector<2x96xf32>
    %388 = vector.extract_strided_slice %387 {offsets = [0, 0], sizes = [2, 32], strides = [1, 1]} : vector<2x96xf32> to vector<2x32xf32>
    %389 = vector.extract_strided_slice %385 {offsets = [0, 0], sizes = [2, 32], strides = [1, 1]} : vector<2x96xf32> to vector<2x32xf32>
    %390 = arith.addf %388, %389 : vector<2x32xf32>
    %391 = arith.negf %390 : vector<2x32xf32>
    %392 = math.exp %391 : vector<2x32xf32>
    %cst_72 = arith.constant 1.000000e+00 : f32
    %393 = vector.broadcast %cst_72 : f32 to vector<2x32xf32>
    %394 = arith.addf %393, %392 : vector<2x32xf32>
    %395 = arith.divf %393, %394 : vector<2x32xf32>
    %396 = vector.extract_strided_slice %387 {offsets = [0, 32], sizes = [2, 32], strides = [1, 1]} : vector<2x96xf32> to vector<2x32xf32>
    %397 = vector.extract_strided_slice %385 {offsets = [0, 32], sizes = [2, 32], strides = [1, 1]} : vector<2x96xf32> to vector<2x32xf32>
    %398 = arith.addf %396, %397 : vector<2x32xf32>
    %399 = arith.negf %398 : vector<2x32xf32>
    %400 = math.exp %399 : vector<2x32xf32>
    %cst_73 = arith.constant 1.000000e+00 : f32
    %401 = vector.broadcast %cst_73 : f32 to vector<2x32xf32>
    %402 = arith.addf %401, %400 : vector<2x32xf32>
    %403 = arith.divf %401, %402 : vector<2x32xf32>
    %404 = vector.extract_strided_slice %387 {offsets = [0, 64], sizes = [2, 32], strides = [1, 1]} : vector<2x96xf32> to vector<2x32xf32>
    %405 = vector.extract_strided_slice %385 {offsets = [0, 64], sizes = [2, 32], strides = [1, 1]} : vector<2x96xf32> to vector<2x32xf32>
    %406 = vector.broadcast %4 : vector<1x32xf32> to vector<2x32xf32>
    %407 = arith.addf %405, %406 : vector<2x32xf32>
    %408 = arith.mulf %395, %407 : vector<2x32xf32>
    %409 = arith.addf %404, %408 : vector<2x32xf32>
    %410 = math.tanh %409 : vector<2x32xf32>
    %411 = arith.subf %382, %410 : vector<2x32xf32>
    %412 = arith.mulf %403, %411 : vector<2x32xf32>
    %413 = arith.addf %410, %412 : vector<2x32xf32>
    %414 = vector.shape_cast %413 : vector<2x32xf32> to vector<2x1x32xf32>
    %c0_74 = arith.constant 0 : index
    %c12 = arith.constant 12 : index
    %c0_75 = arith.constant 0 : index
    %415 = vector.load %arg3[%c0_74, %c12, %c0_75] : memref<2x16x32xf32, #tpu.memory_space<vmem>>, vector<2x1x32xf32>
    tpu.vector_store %arg3[%c0_74, %c12, %c0_75], %414 {strides = array<i32>} : memref<2x16x32xf32, #tpu.memory_space<vmem>>, vector<2x1x32xf32>,
    %cst_76 = arith.constant dense<0.000000e+00> : vector<2x96xf32>
    %416 = tpu.matmul %413, %1, %cst_76 {dimension_numbers = #tpu.dot_dimension_numbers<[1], [0], [0], [1], [0, 0, 1, 1], [], []>} : vector<2x32xf32>, vector<32x96xf32>, vector<2x96xf32> -> vector<2x96xf32>
    %417 = vector.extract_strided_slice %11 {offsets = [0, 13, 0], sizes = [2, 1, 96], strides = [1, 1, 1]} : vector<2x16x96xf32> to vector<2x1x96xf32>
    %418 = vector.shape_cast %417 : vector<2x1x96xf32> to vector<2x96xf32>
    %419 = vector.extract_strided_slice %418 {offsets = [0, 0], sizes = [2, 32], strides = [1, 1]} : vector<2x96xf32> to vector<2x32xf32>
    %420 = vector.extract_strided_slice %416 {offsets = [0, 0], sizes = [2, 32], strides = [1, 1]} : vector<2x96xf32> to vector<2x32xf32>
    %421 = arith.addf %419, %420 : vector<2x32xf32>
    %422 = arith.negf %421 : vector<2x32xf32>
    %423 = math.exp %422 : vector<2x32xf32>
    %cst_77 = arith.constant 1.000000e+00 : f32
    %424 = vector.broadcast %cst_77 : f32 to vector<2x32xf32>
    %425 = arith.addf %424, %423 : vector<2x32xf32>
    %426 = arith.divf %424, %425 : vector<2x32xf32>
    %427 = vector.extract_strided_slice %418 {offsets = [0, 32], sizes = [2, 32], strides = [1, 1]} : vector<2x96xf32> to vector<2x32xf32>
    %428 = vector.extract_strided_slice %416 {offsets = [0, 32], sizes = [2, 32], strides = [1, 1]} : vector<2x96xf32> to vector<2x32xf32>
    %429 = arith.addf %427, %428 : vector<2x32xf32>
    %430 = arith.negf %429 : vector<2x32xf32>
    %431 = math.exp %430 : vector<2x32xf32>
    %cst_78 = arith.constant 1.000000e+00 : f32
    %432 = vector.broadcast %cst_78 : f32 to vector<2x32xf32>
    %433 = arith.addf %432, %431 : vector<2x32xf32>
    %434 = arith.divf %432, %433 : vector<2x32xf32>
    %435 = vector.extract_strided_slice %418 {offsets = [0, 64], sizes = [2, 32], strides = [1, 1]} : vector<2x96xf32> to vector<2x32xf32>
    %436 = vector.extract_strided_slice %416 {offsets = [0, 64], sizes = [2, 32], strides = [1, 1]} : vector<2x96xf32> to vector<2x32xf32>
    %437 = vector.broadcast %4 : vector<1x32xf32> to vector<2x32xf32>
    %438 = arith.addf %436, %437 : vector<2x32xf32>
    %439 = arith.mulf %426, %438 : vector<2x32xf32>
    %440 = arith.addf %435, %439 : vector<2x32xf32>
    %441 = math.tanh %440 : vector<2x32xf32>
    %442 = arith.subf %413, %441 : vector<2x32xf32>
    %443 = arith.mulf %434, %442 : vector<2x32xf32>
    %444 = arith.addf %441, %443 : vector<2x32xf32>
    %445 = vector.shape_cast %444 : vector<2x32xf32> to vector<2x1x32xf32>
    %c0_79 = arith.constant 0 : index
    %c13 = arith.constant 13 : index
    %c0_80 = arith.constant 0 : index
    %446 = vector.load %arg3[%c0_79, %c13, %c0_80] : memref<2x16x32xf32, #tpu.memory_space<vmem>>, vector<2x1x32xf32>
    tpu.vector_store %arg3[%c0_79, %c13, %c0_80], %445 {strides = array<i32>} : memref<2x16x32xf32, #tpu.memory_space<vmem>>, vector<2x1x32xf32>,
    %cst_81 = arith.constant dense<0.000000e+00> : vector<2x96xf32>
    %447 = tpu.matmul %444, %1, %cst_81 {dimension_numbers = #tpu.dot_dimension_numbers<[1], [0], [0], [1], [0, 0, 1, 1], [], []>} : vector<2x32xf32>, vector<32x96xf32>, vector<2x96xf32> -> vector<2x96xf32>
    %448 = vector.extract_strided_slice %11 {offsets = [0, 14, 0], sizes = [2, 1, 96], strides = [1, 1, 1]} : vector<2x16x96xf32> to vector<2x1x96xf32>
    %449 = vector.shape_cast %448 : vector<2x1x96xf32> to vector<2x96xf32>
    %450 = vector.extract_strided_slice %449 {offsets = [0, 0], sizes = [2, 32], strides = [1, 1]} : vector<2x96xf32> to vector<2x32xf32>
    %451 = vector.extract_strided_slice %447 {offsets = [0, 0], sizes = [2, 32], strides = [1, 1]} : vector<2x96xf32> to vector<2x32xf32>
    %452 = arith.addf %450, %451 : vector<2x32xf32>
    %453 = arith.negf %452 : vector<2x32xf32>
    %454 = math.exp %453 : vector<2x32xf32>
    %cst_82 = arith.constant 1.000000e+00 : f32
    %455 = vector.broadcast %cst_82 : f32 to vector<2x32xf32>
    %456 = arith.addf %455, %454 : vector<2x32xf32>
    %457 = arith.divf %455, %456 : vector<2x32xf32>
    %458 = vector.extract_strided_slice %449 {offsets = [0, 32], sizes = [2, 32], strides = [1, 1]} : vector<2x96xf32> to vector<2x32xf32>
    %459 = vector.extract_strided_slice %447 {offsets = [0, 32], sizes = [2, 32], strides = [1, 1]} : vector<2x96xf32> to vector<2x32xf32>
    %460 = arith.addf %458, %459 : vector<2x32xf32>
    %461 = arith.negf %460 : vector<2x32xf32>
    %462 = math.exp %461 : vector<2x32xf32>
    %cst_83 = arith.constant 1.000000e+00 : f32
    %463 = vector.broadcast %cst_83 : f32 to vector<2x32xf32>
    %464 = arith.addf %463, %462 : vector<2x32xf32>
    %465 = arith.divf %463, %464 : vector<2x32xf32>
    %466 = vector.extract_strided_slice %449 {offsets = [0, 64], sizes = [2, 32], strides = [1, 1]} : vector<2x96xf32> to vector<2x32xf32>
    %467 = vector.extract_strided_slice %447 {offsets = [0, 64], sizes = [2, 32], strides = [1, 1]} : vector<2x96xf32> to vector<2x32xf32>
    %468 = vector.broadcast %4 : vector<1x32xf32> to vector<2x32xf32>
    %469 = arith.addf %467, %468 : vector<2x32xf32>
    %470 = arith.mulf %457, %469 : vector<2x32xf32>
    %471 = arith.addf %466, %470 : vector<2x32xf32>
    %472 = math.tanh %471 : vector<2x32xf32>
    %473 = arith.subf %444, %472 : vector<2x32xf32>
    %474 = arith.mulf %465, %473 : vector<2x32xf32>
    %475 = arith.addf %472, %474 : vector<2x32xf32>
    %476 = vector.shape_cast %475 : vector<2x32xf32> to vector<2x1x32xf32>
    %c0_84 = arith.constant 0 : index
    %c14 = arith.constant 14 : index
    %c0_85 = arith.constant 0 : index
    %477 = vector.load %arg3[%c0_84, %c14, %c0_85] : memref<2x16x32xf32, #tpu.memory_space<vmem>>, vector<2x1x32xf32>
    tpu.vector_store %arg3[%c0_84, %c14, %c0_85], %476 {strides = array<i32>} : memref<2x16x32xf32, #tpu.memory_space<vmem>>, vector<2x1x32xf32>,
    %cst_86 = arith.constant dense<0.000000e+00> : vector<2x96xf32>
    %478 = tpu.matmul %475, %1, %cst_86 {dimension_numbers = #tpu.dot_dimension_numbers<[1], [0], [0], [1], [0, 0, 1, 1], [], []>} : vector<2x32xf32>, vector<32x96xf32>, vector<2x96xf32> -> vector<2x96xf32>
    %479 = vector.extract_strided_slice %11 {offsets = [0, 15, 0], sizes = [2, 1, 96], strides = [1, 1, 1]} : vector<2x16x96xf32> to vector<2x1x96xf32>
    %480 = vector.shape_cast %479 : vector<2x1x96xf32> to vector<2x96xf32>
    %481 = vector.extract_strided_slice %480 {offsets = [0, 0], sizes = [2, 32], strides = [1, 1]} : vector<2x96xf32> to vector<2x32xf32>
    %482 = vector.extract_strided_slice %478 {offsets = [0, 0], sizes = [2, 32], strides = [1, 1]} : vector<2x96xf32> to vector<2x32xf32>
    %483 = arith.addf %481, %482 : vector<2x32xf32>
    %484 = arith.negf %483 : vector<2x32xf32>
    %485 = math.exp %484 : vector<2x32xf32>
    %cst_87 = arith.constant 1.000000e+00 : f32
    %486 = vector.broadcast %cst_87 : f32 to vector<2x32xf32>
    %487 = arith.addf %486, %485 : vector<2x32xf32>
    %488 = arith.divf %486, %487 : vector<2x32xf32>
    %489 = vector.extract_strided_slice %480 {offsets = [0, 32], sizes = [2, 32], strides = [1, 1]} : vector<2x96xf32> to vector<2x32xf32>
    %490 = vector.extract_strided_slice %478 {offsets = [0, 32], sizes = [2, 32], strides = [1, 1]} : vector<2x96xf32> to vector<2x32xf32>
    %491 = arith.addf %489, %490 : vector<2x32xf32>
    %492 = arith.negf %491 : vector<2x32xf32>
    %493 = math.exp %492 : vector<2x32xf32>
    %cst_88 = arith.constant 1.000000e+00 : f32
    %494 = vector.broadcast %cst_88 : f32 to vector<2x32xf32>
    %495 = arith.addf %494, %493 : vector<2x32xf32>
    %496 = arith.divf %494, %495 : vector<2x32xf32>
    %497 = vector.extract_strided_slice %480 {offsets = [0, 64], sizes = [2, 32], strides = [1, 1]} : vector<2x96xf32> to vector<2x32xf32>
    %498 = vector.extract_strided_slice %478 {offsets = [0, 64], sizes = [2, 32], strides = [1, 1]} : vector<2x96xf32> to vector<2x32xf32>
    %499 = vector.broadcast %4 : vector<1x32xf32> to vector<2x32xf32>
    %500 = arith.addf %498, %499 : vector<2x32xf32>
    %501 = arith.mulf %488, %500 : vector<2x32xf32>
    %502 = arith.addf %497, %501 : vector<2x32xf32>
    %503 = math.tanh %502 : vector<2x32xf32>
    %504 = arith.subf %475, %503 : vector<2x32xf32>
    %505 = arith.mulf %496, %504 : vector<2x32xf32>
    %506 = arith.addf %503, %505 : vector<2x32xf32>
    %507 = vector.shape_cast %506 : vector<2x32xf32> to vector<2x1x32xf32>
    %c0_89 = arith.constant 0 : index
    %c15 = arith.constant 15 : index
    %c0_90 = arith.constant 0 : index
    %508 = vector.load %arg3[%c0_89, %c15, %c0_90] : memref<2x16x32xf32, #tpu.memory_space<vmem>>, vector<2x1x32xf32>
    tpu.vector_store %arg3[%c0_89, %c15, %c0_90], %507 {strides = array<i32>} : memref<2x16x32xf32, #tpu.memory_space<vmem>>, vector<2x1x32xf32>,
    %c0_91 = arith.constant 0 : index
    %c0_92 = arith.constant 0 : index
    %c0_93 = arith.constant 0 : index
    %509 = vector.load %arg3[%c0_91, %c0_92, %c0_93] : memref<2x16x32xf32, #tpu.memory_space<vmem>>, vector<2x16x32xf32>
    %510 = vector.shape_cast %509 : vector<2x16x32xf32> to vector<32x32xf32>
    %cst_94 = arith.constant dense<0.000000e+00> : vector<32x16xf32>
    %511 = tpu.matmul %510, %2, %cst_94 {dimension_numbers = #tpu.dot_dimension_numbers<[1], [0], [0], [1], [0, 0, 1, 1], [], []>} : vector<32x32xf32>, vector<32x16xf32>, vector<32x16xf32> -> vector<32x16xf32>
    %512 = vector.broadcast %5 : vector<1x16xf32> to vector<32x16xf32>
    %513 = arith.addf %511, %512 : vector<32x16xf32>
    %cst_95 = arith.constant 0.000000e+00 : f32
    %514 = vector.broadcast %cst_95 : f32 to vector<32x16xf32>
    %515 = arith.cmpf ogt, %513, %514 : vector<32x16xf32>
    %cst_96 = arith.constant 0.00999999977 : f32
    %516 = vector.broadcast %cst_96 : f32 to vector<32x16xf32>
    %517 = arith.mulf %516, %513 : vector<32x16xf32>
    %518 = arith.select %515, %513, %517 : vector<32x16xi1>, vector<32x16xf32>
    %519 = vector.shape_cast %518 : vector<32x16xf32> to vector<2x16x16xf32>
    %c0_97 = arith.constant 0 : index
    %c0_98 = arith.constant 0 : index
    %c0_99 = arith.constant 0 : index
    %520 = vector.load %arg2[%c0_97, %c0_98, %c0_99] : memref<2x16x16xf32, #tpu.memory_space<vmem>>, vector<2x16x16xf32>
    tpu.vector_store %arg2[%c0_97, %c0_98, %c0_99], %519 {strides = array<i32>} : memref<2x16x16xf32, #tpu.memory_space<vmem>>, vector<2x16x16xf32>,
    return
  }
}

</mosaic_0001>

<bundles_post_ra>
// kernel: prt_layer_forward.1
= control target key start
LH: loop header
LB: loop body
LE: loop exit
PB: predicated region body
PF: predicated region fallthrough
CT: control target
= control target key end

     0   :  { %7 = vsyncpa [#allocation4], 0  ;;  %s4190_s0 = inlined_call_operand.hbm [shape: f32[2,16,16], index: 0, kind: input, shape index: {}]   ;;  %s4191_s1 = inlined_call_operand.hbm [shape: f32[83,96], index: 1, kind: input, shape index: {}]   ;;  %s4192_s2 = inlined_call_operand.hbm [shape: f32[2,16,16], index: 2, kind: output, shape index: {}]  }
   0x1   :  { %8 = vsyncpa [#allocation7], 0 }
   0x2   :  { %9 = vsyncpa [#allocation5], 0  ;;  %s3476_s9 = smov [#allocation3]  }
   0x3   :  { %s15_s10 = sshll.u32 %s3476_s9, 4  ;;  %s16_s10 = int_to_ptr.vmem [resolvable:$true] %s15_s10 }
   0x4   :  { %s3418_s11 = scalar_lea.vmem %s16_s10, 512  ;;  %p3423_p1 = scmp.lt.s32.totalorder %s16_s10, %s16_s10 }
   0x5   :  { %p3419_p0 = scmp.ne.s32.totalorder %s16_s10, %s3418_s11  ;;  %p3424_p2 = scmp.lt.s32.totalorder %s3418_s11, %s3418_s11 }
   0x7   :  { %p3425_p3 = por %p3424_p2, %p3423_p1 }
   0x9   :  { %p3426_p4 = pnand %p3425_p3, %p3419_p0 }
   0xb   :  { %3429 = shalt.err (!%p3426_p4)
}
   0xc   :  { %s3477_s12 = smov 128   ;;  %s3478_s13 = smov 8  }
   0xd   :  { %21 = dma.hbm_to_vmem [thread:$0]  %s4190_s0, 512, %s16_s10, [#allocation4], %s3477_s12, %s3477_s12, %s3478_s13  }
   0xe   :  { %s3479_s16 = smov [#allocation6]  }
   0xf   :  { %s27_s17 = sshll.u32 %s3479_s16, 4  ;;  %s28_s17 = int_to_ptr.vmem [resolvable:$true] %s27_s17 }
  0x10   :  { %s3438_s18 = scalar_lea.vmem %s28_s17, 1408  ;;  %p3443_p6 = scmp.lt.s32.totalorder %s28_s17, %s28_s17 }
  0x11   :  { %p3439_p5 = scmp.ne.s32.totalorder %s28_s17, %s3438_s18  ;;  %p3444_p7 = scmp.lt.s32.totalorder %s3438_s18, %s3438_s18 }
  0x13   :  { %p3445_p8 = por %p3444_p7, %p3443_p6 }
  0x15   :  { %p3446_p9 = pnand %p3445_p8, %p3439_p5 }
  0x17   :  { %3449 = shalt.err (!%p3446_p9)
}
  0x18   :  { %33 = dma.hbm_to_vmem [thread:$0]  %s4191_s1, 1408, %s28_s17, [#allocation7], %s3477_s12, %s3477_s12, %s3478_s13  }
  0x19   :  { %3470 = dma.done.wait [#allocation4], 512  }
  0x1a   :  { %3471 = vsyncadd [#allocation4], 4294966784 }
  0x1b   :  { %3472 = dma.done.wait [#allocation7], 1408  }
  0x1c   :  { %3473 = vsyncadd [#allocation7], 4294965888  ;;  %v3480_v0 = vmov 0.0   ;;  %vm3481_vm0 = vmmov 0   ;;  %v41_v1 = vld [vmem:[#allocation6 + $0x8] sm:$0xff]  ;;  %v40_v3 = vld [vmem:[#allocation6] sm:$0xff] }
  0x1d   :  { %3014 = vmatprep.subr.mxu1 %v3480_v0  ;;  %3022 = vmatprep.mubr.msk.f32.mxu1 %vm3481_vm0, %v3480_v0  ;;  %v3516_v2 = vld [vmem:[#allocation6 + $0x28] sm:$0xff]  ;;  %v3519_v4 = vld [vmem:[#allocation6 + $0x20] sm:$0xff]  ;;  %vm61_vm1 = vcmask 130048   ;;  %v3523_v7 = vld [vmem:[#allocation6 + $0x18] sm:$0xff]  ;;  %s3482_s0 = smov 64   ;;  %s3483_s1 = smov 96  }
  0x1e   :  { %3004 = vmatprep.subr.mxu0 %v41_v1  ;;  %3015 = vmatpush3.msra.mxu1 %v3516_v2  ;;  %v53_v5 = vld [vmem:[#allocation3] sm:$0xff]  ;;  %v54_v6 = vld [vmem:[#allocation3 + $0x8] sm:$0xff]  ;;  %v55_v8 = vld [vmem:[#allocation3 + $0x10] sm:$0xff]  ;;  %s3484_s21 = smov 32   ;;  %vm316_vm2 = vcmask 1041409   ;;  %vm159_vm3 = vcmask 261120  }
  0x1f   :  { %3005 = vmatpush3.msra.mxu0 %v41_v1  ;;  %3016 = vmatprep.subr.mxu1 %v3480_v0  ;;  %v2859_v9 = vld [vmem:[#allocation6 + $0x51] ss:$0 sm:$0xff]  ;;  %v56_v11 = vld [vmem:[#allocation3 + $0x18] sm:$0xff]  ;;  %v2852_v13 = vld [vmem:[#allocation6 + $0x50] ss:$0 sm:$0xff]  ;;  %vm471_vm4 = vcmask 254977  }
  0x20   :  { %3006 = vmatprep.subr.mxu0 %v40_v3  ;;  %3017 = vmatpush3.msra.mxu1 %v3519_v4  ;;  %v3528_v10 = vld [vmem:[#allocation6 + $0x10] sm:$0xff]  ;;  %vm792_vm5 = vcmask 257027   ;;  %vm312_vm6 = vcmask 253952   ;;  %vm1114_vm7 = vcmask 259077   ;;  %vm631_vm8 = vcmask 256002   ;;  %s3485_s22 = smov [#allocation8]  }
  0x21   :  { %3007 = vmatpush3.msra.mxu0 %v40_v3  ;;  %3008 = vmatprep.mubr.msk.f32.mxu0 %vm61_vm1, %v53_v5  ;;  %vm1436_vm9 = vcmask 261127   ;;  %vm953_vm10 = vcmask 258052   ;;  %vm1275_vm11 = vcmask 260102   ;;  %s2839_s23 = sshll.u32 %s3485_s22, 4  ;;  %s2840_s23 = int_to_ptr.vmem [resolvable:$true] %s2839_s23 }
  0x22   :  { %3018 = vmatprep.subr.mxu1 %v3480_v0  ;;  %3009 = vmatmul.mubr.msk.f32.vlgmr.msra.gmra.mxu0 %vm61_vm1, %v54_v6  ;;  %s3450_s24 = scalar_lea.vmem %s2840_s23, 512  ;;  %p3455_p11 = scmp.lt.s32.totalorder %s2840_s23, %s2840_s23 }
  0x23   :  { %3019 = vmatpush3.msra.mxu1 %v3523_v7  ;;  %3011 = vmatprep.mubr.msk.f32.mxu0 %vm61_vm1, %v55_v8  ;;  %p3451_p10 = scmp.ne.s32.totalorder %s2840_s23, %s3450_s24  ;;  %p3456_p12 = scmp.lt.s32.totalorder %s3450_s24, %s3450_s24 }
  0x24   :  { %3020 = vmatprep.subr.mxu1 %v3480_v0  ;;  %256 = vrot.lane.b32.xlu0 %v2859_v9, %s3482_s0 }
  0x25   :  { %3021 = vmatpush3.msra.mxu1 %v3528_v10  ;;  %3025 = vmatprep.subr.mxu0 %v3480_v0  ;;  %p3457_p13 = por %p3456_p12, %p3455_p11 }
  0x26   :  { %3023 = vmatmul.mubr.f32.vlgmr.msra.gmra.mxu1 %v3480_v0  ;;  %3012 = vmatmul.mubr.msk.f32.gmra.mxu0 %vm61_vm1, %v56_v11 }
  0x27   :  { %3026 = vmatpush3.msra.mxu0 %v3516_v2  ;;  %3033 = vmatprep.mubr.msk.f32.mxu0 %vm3481_vm0, %v3480_v0  ;;  %p3458_p0 = pnand %p3457_p13, %p3451_p10 }
  0x28   :  { %3027 = vmatprep.subr.mxu0 %v3480_v0  ;;  %3036 = vmatprep.subr.mxu1 %v3480_v0 }
  0x29   :  { %3028 = vmatpush3.msra.mxu0 %v3519_v4  ;;  %3037 = vmatpush3.msra.mxu1 %v3516_v2 }
  0x2a   :  { %3029 = vmatprep.subr.mxu0 %v3480_v0  ;;  %3038 = vmatprep.subr.mxu1 %v3480_v0 }
  0x2b   :  { %3030 = vmatpush3.msra.mxu0 %v3523_v7  ;;  %3039 = vmatpush3.msra.mxu1 %v3519_v4 }
  0x2c   :  { %3031 = vmatprep.subr.mxu0 %v3480_v0  ;;  %3040 = vmatprep.subr.mxu1 %v3480_v0 }
  0x2d   :  { %3032 = vmatpush3.msra.mxu0 %v3528_v10  ;;  %3041 = vmatpush3.msra.mxu1 %v3523_v7 }
  0x2e   :  { %3042 = vmatprep.subr.mxu1 %v3480_v0  ;;  %3044 = vmatprep.mubr.msk.f32.mxu1 %vm3481_vm0, %v3480_v0 }
  0x2f   :  { %3043 = vmatpush3.msra.mxu1 %v3528_v10  ;;  %3047 = vmatprep.subr.mxu0 %v3480_v0 }
  0x30   :  { %3058 = vmatprep.subr.mxu1 %v3480_v0 }
  0x96   :  { %v3561_v16 = vpop.permute.xlu0 %256 }
  0xe2   :  { %v3010_v12 = vpop.f32.mrf.mxu0 }
  0xe3   :  { %v3559_v14 = vadd.f32 %v3010_v12, %v2852_v13 }
  0xe4   :  { %v140_v15 = vpop.f32.mrf.mxu0 }
  0xe5   :  { %v3568_v24 = vadd.f32 %v2852_v13, %v140_v15 }
  0xe6   :  { %v229_v17 = vpop.f32.mrf.mxu1  ;;  %v3013_v18 = vpop.f32.mrf.mxu0 }
  0xe7   :  { %v3563_v19 = vadd.f32 %v3013_v18, %v2852_v13  ;;  %v259_v20 = vadd.f32 %v3561_v16, %v229_v17  ;;  %v234_v26 = vrot.slane %v229_v17, 1  ;;  %v237_v27 = vadd.f32 %v229_v17, %v3568_v24 }
  0xe8   :  { %v3024_v21 = vpop.f32.mrf.mxu1  ;;  %v150_v23 = vpop.f32.mrf.mxu0 }
  0xe9   :  { %262 = vrot.lane.b32.xlu1 %v259_v20, %s3482_s0  ;;  %v261_v22 = vrot.slane %v259_v20, 1  ;;  %v3570_v25 = vadd.f32 %v2852_v13, %v150_v23  ;;  %v2857_v29 = vmul.f32 -1.442695, %v237_v27 }
  0xeb   :  { %264 = vrot.lane.b32.xlu0 %v261_v22, %s3482_s0  ;;  %v238_v28 = vadd.f32 %v234_v26, %v3570_v25  ;;  %3214 = vpow2.f32 %v2857_v29 }
  0xed   :  { %v2858_v30 = vmul.f32 -1.442695, %v238_v28 }
  0xef   :  { %3216 = vpow2.f32 %v2858_v30 }
  0xf8   :  { %v3215_v31 = vpop.eup %3214 }
  0xf9   :  { %v245_v33 = vadd.f32 1.0, %v3215_v31 }
  0xfb   :  { %3218 = vrcp.f32 %v245_v33 }
  0xfc   :  { %v3217_v32 = vpop.eup %3216 }
  0xfd   :  { %v246_v34 = vadd.f32 1.0, %v3217_v32 }
  0xff   :  { %3220 = vrcp.f32 %v246_v34 }
 0x108   :  { %v3219_v35 = vpop.eup %3218 }
 0x10c   :  { %v3221_v38 = vpop.eup %3220 }
 0x15b   :  { %v263_v36 = vpop.permute.xlu1 %262 }
 0x15c   :  { %v268_v37 = vmul.f32 %v3219_v35, %v263_v36 }
 0x15d   :  { %v265_v39 = vpop.permute.xlu0 %264 }
 0x15e   :  { %v269_v40 = vmul.f32 %v3221_v38, %v265_v39  ;;  %272 = vrot.lane.b32.xlu0 %v268_v37, %s3482_s0 }
 0x160   :  { %274 = vrot.lane.b32.xlu1 %v269_v40, %s3482_s0 }
 0x1d0   :  { %v273_v41 = vpop.permute.xlu0 %272 }
 0x1d1   :  { %v278_v42 = vadd.f32 %v273_v41, %v3568_v24 }
 0x1d2   :  { %v275_v43 = vpop.permute.xlu1 %274 }
 0x1d3   :  { %3222 = vtanh.f32 %v278_v42  ;;  %v279_v44 = vadd.f32 %v275_v43, %v3570_v25 }
 0x1d5   :  { %3224 = vtanh.f32 %v279_v44 }
 0x1e0   :  { %v3223_v45 = vpop.eup %3222 }
 0x1e1   :  { %v282_v46 = vsub.f32 0.0, %v3223_v45 }
 0x1e2   :  { %v3225_v47 = vpop.eup %3224 }
 0x1e3   :  { %286 = vrot.lane.b32.xlu0 %v282_v46, %s3483_s1  ;;  %v283_v48 = vsub.f32 0.0, %v3225_v47 }
 0x1e5   :  { %288 = vrot.lane.b32.xlu1 %v283_v48, %s3483_s1 }
 0x255   :  { %v287_v49 = vpop.permute.xlu0 %286 }
 0x256   :  { %v292_v50 = vmul.f32 %v3219_v35, %v287_v49 }
 0x257   :  { %v289_v51 = vpop.permute.xlu1 %288 }
 0x258   :  { %v293_v52 = vmul.f32 %v3221_v38, %v289_v51  ;;  %296 = vrot.lane.b32.xlu0 %v292_v50, %s3484_s21 }
 0x25a   :  { %298 = vrot.lane.b32.xlu1 %v293_v52, %s3484_s21 }
 0x2ca   :  { %v297_v53 = vpop.permute.xlu0 %296 }
 0x2cb   :  { %v3584_v56 = vadd.f32 %v3223_v45, %v297_v53 }
 0x2cc   :  { %v299_v54 = vpop.permute.xlu1 %298 }
 0x2cd   :  { %v3582_v55 = vadd.f32 %v3225_v47, %v299_v54 }
 0x2cf   :  { %v315_v57 = vrot.slane %v3582_v55, 7 }
 0x2d1   :  { %v317_v58 = vsel %vm316_vm2, %v315_v57, %v3584_v56 }
 0x2d2   :  { %318 = vrot.lane.b32.xlu1 %v317_v58, %s3482_s0 }
 0x344   :  { %v319_v59 = vpop.permute.xlu1 %318 }
 0x345   :  { %3034 = vmatmul.mubr.msk.f32.vlgmr.msra.gmra.mxu0 %vm159_vm3, %v319_v59 }
 0x346   :  { %3048 = vmatpush3.msra.mxu0 %v3516_v2  ;;  %3055 = vmatprep.mubr.msk.f32.mxu0 %vm3481_vm0, %v3480_v0 }
 0x347   :  { %3049 = vmatprep.subr.mxu0 %v3480_v0 }
 0x348   :  { %3050 = vmatpush3.msra.mxu0 %v3519_v4 }
 0x349   :  { %3051 = vmatprep.subr.mxu0 %v3480_v0 }
 0x34a   :  { %3052 = vmatpush3.msra.mxu0 %v3523_v7 }
 0x34b   :  { %3053 = vmatprep.subr.mxu0 %v3480_v0 }
 0x34c   :  { %3054 = vmatpush3.msra.mxu0 %v3528_v10 }
 0x34d   :  { %3069 = vmatprep.subr.mxu0 %v3480_v0 }
 0x405   :  { %v388_v60 = vpop.f32.mrf.mxu0 }
 0x406   :  { %v410_v61 = vadd.f32 %v388_v60, %v3561_v16  ;;  %v393_v1 = vrot.slane %v388_v60, 7  ;;  %v397_v3 = vadd.f32 %v388_v60, %v3570_v25 }
 0x407   :  { %v3035_v62 = vpop.f32.mrf.mxu0 }
 0x408   :  { %415 = vrot.lane.b32.xlu1 %v410_v61, %s3482_s0  ;;  %v412_v63 = vrot.slane %v410_v61, 7  ;;  %v396_v5 = vadd.f32 %v393_v1, %v3568_v24  ;;  %v2862_v6 = vmul.f32 -1.442695, %v397_v3 }
 0x40a   :  { %413 = vrot.lane.b32.xlu0 %v412_v63, %s3482_s0  ;;  %v2861_v8 = vmul.f32 -1.442695, %v396_v5  ;;  %3226 = vpow2.f32 %v2862_v6 }
 0x40c   :  { %3228 = vpow2.f32 %v2861_v8 }
 0x417   :  { %v3227_v9 = vpop.eup %3226 }
 0x418   :  { %v405_v12 = vadd.f32 1.0, %v3227_v9 }
 0x419   :  { %v3229_v11 = vpop.eup %3228 }
 0x41a   :  { %v404_v13 = vadd.f32 1.0, %v3229_v11  ;;  %3230 = vrcp.f32 %v405_v12 }
 0x41c   :  { %3232 = vrcp.f32 %v404_v13 }
 0x427   :  { %v3231_v15 = vpop.eup %3230 }
 0x429   :  { %v3233_v20 = vpop.eup %3232 }
 0x47a   :  { %v416_v17 = vpop.permute.xlu1 %415 }
 0x47b   :  { %v420_v18 = vmul.f32 %v3231_v15, %v416_v17 }
 0x47c   :  { %v414_v21 = vpop.permute.xlu0 %413 }
 0x47d   :  { %v419_v22 = vmul.f32 %v3233_v20, %v414_v21  ;;  %425 = vrot.lane.b32.xlu1 %v420_v18, %s3482_s0 }
 0x47f   :  { %423 = vrot.lane.b32.xlu0 %v419_v22, %s3482_s0 }
 0x4ef   :  { %v426_v23 = vpop.permute.xlu1 %425 }
 0x4f0   :  { %v430_v26 = vadd.f32 %v426_v23, %v3570_v25 }
 0x4f1   :  { %v424_v27 = vpop.permute.xlu0 %423 }
 0x4f2   :  { %3234 = vtanh.f32 %v430_v26  ;;  %v429_v28 = vadd.f32 %v424_v27, %v3568_v24 }
 0x4f4   :  { %3236 = vtanh.f32 %v429_v28 }
 0x4ff   :  { %v3235_v29 = vpop.eup %3234 }
 0x500   :  { %v436_v30 = vrot.slane %v3235_v29, 1 }
 0x501   :  { %v3237_v31 = vpop.eup %3236 }
 0x502   :  { %v440_v32 = vsub.f32 %v3582_v55, %v436_v30  ;;  %v435_v33 = vrot.slane %v3237_v31, 1 }
 0x504   :  { %v444_v34 = vrot.slane %v440_v32, 7  ;;  %v439_v35 = vsub.f32 %v3584_v56, %v435_v33 }
 0x506   :  { %447 = vrot.lane.b32.xlu1 %v444_v34, %s3483_s1  ;;  %v443_v36 = vrot.slane %v439_v35, 7 }
 0x508   :  { %445 = vrot.lane.b32.xlu0 %v443_v36, %s3483_s1 }
 0x578   :  { %v448_v37 = vpop.permute.xlu1 %447 }
 0x579   :  { %v452_v38 = vmul.f32 %v3231_v15, %v448_v37 }
 0x57a   :  { %v446_v39 = vpop.permute.xlu0 %445 }
 0x57b   :  { %v451_v40 = vmul.f32 %v3233_v20, %v446_v39  ;;  %457 = vrot.lane.b32.xlu1 %v452_v38, %s3484_s21 }
 0x57d   :  { %455 = vrot.lane.b32.xlu0 %v451_v40, %s3484_s21 }
 0x5ed   :  { %v458_v41 = vpop.permute.xlu1 %457 }
 0x5ee   :  { %v3618_v44 = vadd.f32 %v3235_v29, %v458_v41 }
 0x5ef   :  { %v456_v42 = vpop.permute.xlu0 %455 }
 0x5f0   :  { %v3616_v43 = vadd.f32 %v3237_v31, %v456_v42 }
 0x5f2   :  { %v474_v45 = vrot.slane %v3616_v43, 1 }
 0x5f4   :  { %v475_v46 = vsel %vm316_vm2, %v3618_v44, %v474_v45 }
 0x5f5   :  { %476 = vrot.lane.b32.xlu0 %v475_v46, %s3482_s0 }
 0x667   :  { %v477_v47 = vpop.permute.xlu0 %476 }
 0x668   :  { %3045 = vmatmul.mubr.msk.f32.vlgmr.msra.gmra.mxu1 %vm159_vm3, %v477_v47 }
 0x669   :  { %3059 = vmatpush3.msra.mxu1 %v3516_v2  ;;  %3066 = vmatprep.mubr.msk.f32.mxu1 %vm3481_vm0, %v3480_v0 }
 0x66a   :  { %3060 = vmatprep.subr.mxu1 %v3480_v0 }
 0x66b   :  { %3061 = vmatpush3.msra.mxu1 %v3519_v4 }
 0x66c   :  { %3062 = vmatprep.subr.mxu1 %v3480_v0 }
 0x66d   :  { %3063 = vmatpush3.msra.mxu1 %v3523_v7 }
 0x66e   :  { %3064 = vmatprep.subr.mxu1 %v3480_v0 }
 0x66f   :  { %3065 = vmatpush3.msra.mxu1 %v3528_v10 }
 0x670   :  { %3080 = vmatprep.subr.mxu1 %v3480_v0 }
 0x728   :  { %v546_v48 = vpop.f32.mrf.mxu1 }
 0x729   :  { %v569_v49 = vadd.f32 %v546_v48, %v3561_v16  ;;  %v551_v53 = vrot.slane %v546_v48, 6  ;;  %v552_v54 = vrot.slane %v546_v48, 7 }
 0x72a   :  { %v3046_v50 = vpop.f32.mrf.mxu1 }
 0x72b   :  { %v572_v51 = vrot.slane %v569_v49, 7  ;;  %v571_v52 = vrot.slane %v569_v49, 6  ;;  %v555_v57 = vadd.f32 %v551_v53, %v3568_v24  ;;  %v556_v58 = vadd.f32 %v552_v54, %v3570_v25 }
 0x72d   :  { %575 = vrot.lane.b32.xlu0 %v572_v51, %s3482_s0  ;;  %573 = vrot.lane.b32.xlu1 %v571_v52, %s3482_s0  ;;  %v2864_v59 = vmul.f32 -1.442695, %v555_v57  ;;  %v2865_v60 = vmul.f32 -1.442695, %v556_v58 }
 0x72f   :  { %3238 = vpow2.f32 %v2864_v59 }
 0x730   :  { %3240 = vpow2.f32 %v2865_v60 }
 0x73c   :  { %v3239_v61 = vpop.eup %3238 }
 0x73d   :  { %v3241_v62 = vpop.eup %3240  ;;  %v563_v63 = vadd.f32 1.0, %v3239_v61 }
 0x73e   :  { %v564_v1 = vadd.f32 1.0, %v3241_v62 }
 0x73f   :  { %3242 = vrcp.f32 %v563_v63 }
 0x740   :  { %3244 = vrcp.f32 %v564_v1 }
 0x74c   :  { %v3243_v3 = vpop.eup %3242 }
 0x74d   :  { %v3245_v5 = vpop.eup %3244 }
 0x79f   :  { %v576_v6 = vpop.permute.xlu0 %575  ;;  %v574_v8 = vpop.permute.xlu1 %573 }
 0x7a0   :  { %v580_v9 = vmul.f32 %v3245_v5, %v576_v6  ;;  %v579_v11 = vmul.f32 %v3243_v3, %v574_v8 }
 0x7a2   :  { %585 = vrot.lane.b32.xlu0 %v580_v9, %s3482_s0  ;;  %583 = vrot.lane.b32.xlu1 %v579_v11, %s3482_s0 }
 0x814   :  { %v586_v12 = vpop.permute.xlu0 %585  ;;  %v584_v13 = vpop.permute.xlu1 %583 }
 0x815   :  { %v590_v15 = vadd.f32 %v586_v12, %v3570_v25  ;;  %v589_v17 = vadd.f32 %v584_v13, %v3568_v24 }
 0x817   :  { %3246 = vtanh.f32 %v590_v15 }
 0x818   :  { %3248 = vtanh.f32 %v589_v17 }
 0x824   :  { %v3247_v18 = vpop.eup %3246 }
 0x825   :  { %v3249_v20 = vpop.eup %3248  ;;  %v596_v21 = vrot.slane %v3247_v18, 1 }
 0x826   :  { %v595_v22 = vrot.slane %v3249_v20, 1 }
 0x827   :  { %v600_v23 = vsub.f32 %v3618_v44, %v596_v21 }
 0x828   :  { %v599_v26 = vsub.f32 %v3616_v43, %v595_v22 }
 0x829   :  { %v604_v27 = vrot.slane %v600_v23, 7 }
 0x82a   :  { %v603_v28 = vrot.slane %v599_v26, 7 }
 0x82b   :  { %607 = vrot.lane.b32.xlu0 %v604_v27, %s3483_s1 }
 0x82c   :  { %605 = vrot.lane.b32.xlu1 %v603_v28, %s3483_s1 }
 0x89d   :  { %v608_v29 = vpop.permute.xlu0 %607 }
 0x89e   :  { %v612_v30 = vmul.f32 %v3245_v5, %v608_v29  ;;  %v606_v31 = vpop.permute.xlu1 %605 }
 0x89f   :  { %v611_v32 = vmul.f32 %v3243_v3, %v606_v31 }
 0x8a0   :  { %617 = vrot.lane.b32.xlu0 %v612_v30, %s3484_s21 }
 0x8a1   :  { %615 = vrot.lane.b32.xlu1 %v611_v32, %s3484_s21 }
 0x912   :  { %v618_v33 = vpop.permute.xlu0 %617 }
 0x913   :  { %v3650_v34 = vadd.f32 %v3247_v18, %v618_v33  ;;  %v616_v35 = vpop.permute.xlu1 %615 }
 0x914   :  { %v3652_v36 = vadd.f32 %v3249_v20, %v616_v35 }
 0x915   :  { %v635_v37 = vrot.slane %v3650_v34, 1 }
 0x916   :  { %v634_v38 = vrot.slane %v3652_v36, 2 }
 0x918   :  { %v636_v39 = vsel %vm316_vm2, %v635_v37, %v634_v38 }
 0x919   :  { %637 = vrot.lane.b32.xlu1 %v636_v39, %s3482_s0 }
 0x98b   :  { %v638_v40 = vpop.permute.xlu1 %637 }
 0x98c   :  { %3056 = vmatmul.mubr.msk.f32.vlgmr.msra.gmra.mxu0 %vm159_vm3, %v638_v40 }
 0x98d   :  { %3070 = vmatpush3.msra.mxu0 %v3516_v2  ;;  %3077 = vmatprep.mubr.msk.f32.mxu0 %vm3481_vm0, %v3480_v0 }
 0x98e   :  { %3071 = vmatprep.subr.mxu0 %v3480_v0 }
 0x98f   :  { %3072 = vmatpush3.msra.mxu0 %v3519_v4 }
 0x990   :  { %3073 = vmatprep.subr.mxu0 %v3480_v0 }
 0x991   :  { %3074 = vmatpush3.msra.mxu0 %v3523_v7 }
 0x992   :  { %3075 = vmatprep.subr.mxu0 %v3480_v0 }
 0x993   :  { %3076 = vmatpush3.msra.mxu0 %v3528_v10 }
 0x994   :  { %3091 = vmatprep.subr.mxu0 %v3480_v0 }
 0xa4c   :  { %v707_v41 = vpop.f32.mrf.mxu0 }
 0xa4d   :  { %v730_v42 = vadd.f32 %v707_v41, %v3561_v16  ;;  %v712_v48 = vrot.slane %v707_v41, 5  ;;  %v713_v49 = vrot.slane %v707_v41, 6 }
 0xa4e   :  { %v3057_v45 = vpop.f32.mrf.mxu0 }
 0xa4f   :  { %v733_v46 = vrot.slane %v730_v42, 6  ;;  %v732_v47 = vrot.slane %v730_v42, 5  ;;  %v716_v50 = vadd.f32 %v712_v48, %v3568_v24  ;;  %v717_v51 = vadd.f32 %v713_v49, %v3570_v25 }
 0xa51   :  { %736 = vrot.lane.b32.xlu1 %v733_v46, %s3482_s0  ;;  %734 = vrot.lane.b32.xlu0 %v732_v47, %s3482_s0  ;;  %v2867_v52 = vmul.f32 -1.442695, %v716_v50  ;;  %v2868_v53 = vmul.f32 -1.442695, %v717_v51 }
 0xa53   :  { %3250 = vpow2.f32 %v2867_v52 }
 0xa54   :  { %3252 = vpow2.f32 %v2868_v53 }
 0xa60   :  { %v3251_v54 = vpop.eup %3250 }
 0xa61   :  { %v3253_v57 = vpop.eup %3252  ;;  %v724_v58 = vadd.f32 1.0, %v3251_v54 }
 0xa62   :  { %v725_v59 = vadd.f32 1.0, %v3253_v57 }
 0xa63   :  { %3254 = vrcp.f32 %v724_v58 }
 0xa64   :  { %3256 = vrcp.f32 %v725_v59 }
 0xa70   :  { %v3255_v60 = vpop.eup %3254 }
 0xa71   :  { %v3257_v61 = vpop.eup %3256 }
 0xac3   :  { %v737_v62 = vpop.permute.xlu1 %736  ;;  %v735_v63 = vpop.permute.xlu0 %734 }
 0xac4   :  { %v741_v1 = vmul.f32 %v3257_v61, %v737_v62  ;;  %v740_v3 = vmul.f32 %v3255_v60, %v735_v63 }
 0xac6   :  { %746 = vrot.lane.b32.xlu1 %v741_v1, %s3482_s0  ;;  %744 = vrot.lane.b32.xlu0 %v740_v3, %s3482_s0 }
 0xb38   :  { %v747_v5 = vpop.permute.xlu1 %746  ;;  %v745_v6 = vpop.permute.xlu0 %744 }
 0xb39   :  { %v751_v8 = vadd.f32 %v747_v5, %v3570_v25  ;;  %v750_v9 = vadd.f32 %v745_v6, %v3568_v24 }
 0xb3b   :  { %3258 = vtanh.f32 %v751_v8 }
 0xb3c   :  { %3260 = vtanh.f32 %v750_v9 }
 0xb48   :  { %v3259_v11 = vpop.eup %3258 }
 0xb49   :  { %v3261_v12 = vpop.eup %3260  ;;  %v757_v13 = vrot.slane %v3259_v11, 1 }
 0xb4a   :  { %v756_v15 = vrot.slane %v3261_v12, 1 }
 0xb4b   :  { %v761_v17 = vsub.f32 %v3650_v34, %v757_v13 }
 0xb4c   :  { %v760_v18 = vsub.f32 %v3652_v36, %v756_v15 }
 0xb4d   :  { %v765_v20 = vrot.slane %v761_v17, 7 }
 0xb4e   :  { %v764_v21 = vrot.slane %v760_v18, 7 }
 0xb4f   :  { %768 = vrot.lane.b32.xlu1 %v765_v20, %s3483_s1 }
 0xb50   :  { %766 = vrot.lane.b32.xlu0 %v764_v21, %s3483_s1 }
 0xbc1   :  { %v769_v22 = vpop.permute.xlu1 %768 }
 0xbc2   :  { %v773_v23 = vmul.f32 %v3257_v61, %v769_v22  ;;  %v767_v26 = vpop.permute.xlu0 %766 }
 0xbc3   :  { %v772_v27 = vmul.f32 %v3255_v60, %v767_v26 }
 0xbc4   :  { %778 = vrot.lane.b32.xlu1 %v773_v23, %s3484_s21 }
 0xbc5   :  { %776 = vrot.lane.b32.xlu0 %v772_v27, %s3484_s21 }
 0xc36   :  { %v779_v28 = vpop.permute.xlu1 %778 }
 0xc37   :  { %v3684_v29 = vadd.f32 %v3259_v11, %v779_v28  ;;  %v777_v30 = vpop.permute.xlu0 %776 }
 0xc38   :  { %v3686_v31 = vadd.f32 %v3261_v12, %v777_v30 }
 0xc39   :  { %v796_v32 = vrot.slane %v3684_v29, 2 }
 0xc3a   :  { %v795_v33 = vrot.slane %v3686_v31, 3 }
 0xc3c   :  { %v797_v35 = vsel %vm316_vm2, %v796_v32, %v795_v33 }
 0xc3d   :  { %798 = vrot.lane.b32.xlu0 %v797_v35, %s3482_s0 }
 0xcaf   :  { %v799_v37 = vpop.permute.xlu0 %798 }
 0xcb0   :  { %3067 = vmatmul.mubr.msk.f32.vlgmr.msra.gmra.mxu1 %vm159_vm3, %v799_v37 }
 0xcb1   :  { %3081 = vmatpush3.msra.mxu1 %v3516_v2  ;;  %3088 = vmatprep.mubr.msk.f32.mxu1 %vm3481_vm0, %v3480_v0 }
 0xcb2   :  { %3082 = vmatprep.subr.mxu1 %v3480_v0 }
 0xcb3   :  { %3083 = vmatpush3.msra.mxu1 %v3519_v4 }
 0xcb4   :  { %3084 = vmatprep.subr.mxu1 %v3480_v0 }
 0xcb5   :  { %3085 = vmatpush3.msra.mxu1 %v3523_v7 }
 0xcb6   :  { %3086 = vmatprep.subr.mxu1 %v3480_v0 }
 0xcb7   :  { %3087 = vmatpush3.msra.mxu1 %v3528_v10 }
 0xcb8   :  { %3102 = vmatprep.subr.mxu1 %v3480_v0 }
 0xd70   :  { %v868_v38 = vpop.f32.mrf.mxu1 }
 0xd71   :  { %v891_v39 = vadd.f32 %v868_v38, %v3561_v16  ;;  %v873_v45 = vrot.slane %v868_v38, 4  ;;  %v874_v46 = vrot.slane %v868_v38, 5 }
 0xd72   :  { %v3068_v40 = vpop.f32.mrf.mxu1 }
 0xd73   :  { %v894_v41 = vrot.slane %v891_v39, 5  ;;  %v893_v42 = vrot.slane %v891_v39, 4  ;;  %v877_v47 = vadd.f32 %v873_v45, %v3568_v24  ;;  %v878_v48 = vadd.f32 %v874_v46, %v3570_v25 }
 0xd75   :  { %897 = vrot.lane.b32.xlu0 %v894_v41, %s3482_s0  ;;  %895 = vrot.lane.b32.xlu1 %v893_v42, %s3482_s0  ;;  %v2870_v49 = vmul.f32 -1.442695, %v877_v47  ;;  %v2871_v50 = vmul.f32 -1.442695, %v878_v48 }
 0xd77   :  { %3262 = vpow2.f32 %v2870_v49 }
 0xd78   :  { %3264 = vpow2.f32 %v2871_v50 }
 0xd84   :  { %v3263_v51 = vpop.eup %3262 }
 0xd85   :  { %v3265_v52 = vpop.eup %3264  ;;  %v885_v53 = vadd.f32 1.0, %v3263_v51 }
 0xd86   :  { %v886_v54 = vadd.f32 1.0, %v3265_v52 }
 0xd87   :  { %3266 = vrcp.f32 %v885_v53 }
 0xd88   :  { %3268 = vrcp.f32 %v886_v54 }
 0xd94   :  { %v3267_v57 = vpop.eup %3266 }
 0xd95   :  { %v3269_v58 = vpop.eup %3268 }
 0xde7   :  { %v898_v59 = vpop.permute.xlu0 %897  ;;  %v896_v60 = vpop.permute.xlu1 %895 }
 0xde8   :  { %v902_v61 = vmul.f32 %v3269_v58, %v898_v59  ;;  %v901_v62 = vmul.f32 %v3267_v57, %v896_v60 }
 0xdea   :  { %907 = vrot.lane.b32.xlu0 %v902_v61, %s3482_s0  ;;  %905 = vrot.lane.b32.xlu1 %v901_v62, %s3482_s0 }
 0xe5c   :  { %v908_v63 = vpop.permute.xlu0 %907  ;;  %v906_v1 = vpop.permute.xlu1 %905 }
 0xe5d   :  { %v912_v3 = vadd.f32 %v908_v63, %v3570_v25  ;;  %v911_v5 = vadd.f32 %v906_v1, %v3568_v24 }
 0xe5f   :  { %3270 = vtanh.f32 %v912_v3 }
 0xe60   :  { %3272 = vtanh.f32 %v911_v5 }
 0xe6c   :  { %v3271_v6 = vpop.eup %3270 }
 0xe6d   :  { %v3273_v8 = vpop.eup %3272  ;;  %v918_v9 = vrot.slane %v3271_v6, 1 }
 0xe6e   :  { %v917_v11 = vrot.slane %v3273_v8, 1 }
 0xe6f   :  { %v922_v12 = vsub.f32 %v3684_v29, %v918_v9 }
 0xe70   :  { %v921_v13 = vsub.f32 %v3686_v31, %v917_v11 }
 0xe71   :  { %v926_v15 = vrot.slane %v922_v12, 7 }
 0xe72   :  { %v925_v17 = vrot.slane %v921_v13, 7 }
 0xe73   :  { %929 = vrot.lane.b32.xlu0 %v926_v15, %s3483_s1 }
 0xe74   :  { %927 = vrot.lane.b32.xlu1 %v925_v17, %s3483_s1 }
 0xee5   :  { %v930_v18 = vpop.permute.xlu0 %929 }
 0xee6   :  { %v934_v20 = vmul.f32 %v3269_v58, %v930_v18  ;;  %v928_v21 = vpop.permute.xlu1 %927 }
 0xee7   :  { %v933_v22 = vmul.f32 %v3267_v57, %v928_v21 }
 0xee8   :  { %939 = vrot.lane.b32.xlu0 %v934_v20, %s3484_s21 }
 0xee9   :  { %937 = vrot.lane.b32.xlu1 %v933_v22, %s3484_s21 }
 0xf5a   :  { %v940_v23 = vpop.permute.xlu0 %939 }
 0xf5b   :  { %v3718_v26 = vadd.f32 %v3271_v6, %v940_v23  ;;  %v938_v27 = vpop.permute.xlu1 %937 }
 0xf5c   :  { %v3720_v28 = vadd.f32 %v3273_v8, %v938_v27 }
 0xf5d   :  { %v957_v30 = vrot.slane %v3718_v26, 3 }
 0xf5e   :  { %v956_v32 = vrot.slane %v3720_v28, 4 }
 0xf60   :  { %v958_v33 = vsel %vm316_vm2, %v957_v30, %v956_v32 }
 0xf61   :  { %959 = vrot.lane.b32.xlu1 %v958_v33, %s3482_s0 }
 0xfd3   :  { %v960_v35 = vpop.permute.xlu1 %959 }
 0xfd4   :  { %3078 = vmatmul.mubr.msk.f32.vlgmr.msra.gmra.mxu0 %vm159_vm3, %v960_v35 }
 0xfd5   :  { %3092 = vmatpush3.msra.mxu0 %v3516_v2  ;;  %3099 = vmatprep.mubr.msk.f32.mxu0 %vm3481_vm0, %v3480_v0 }
 0xfd6   :  { %3093 = vmatprep.subr.mxu0 %v3480_v0 }
 0xfd7   :  { %3094 = vmatpush3.msra.mxu0 %v3519_v4 }
 0xfd8   :  { %3095 = vmatprep.subr.mxu0 %v3480_v0 }
 0xfd9   :  { %3096 = vmatpush3.msra.mxu0 %v3523_v7 }
 0xfda   :  { %3097 = vmatprep.subr.mxu0 %v3480_v0 }
 0xfdb   :  { %3098 = vmatpush3.msra.mxu0 %v3528_v10 }
 0xfdc   :  { %3113 = vmatprep.subr.mxu0 %v3480_v0 }
0x1094   :  { %v1029_v37 = vpop.f32.mrf.mxu0 }
0x1095   :  { %v1052_v38 = vadd.f32 %v1029_v37, %v3561_v16  ;;  %v1034_v42 = vrot.slane %v1029_v37, 3  ;;  %v1035_v45 = vrot.slane %v1029_v37, 4 }
0x1096   :  { %v3079_v39 = vpop.f32.mrf.mxu0 }
0x1097   :  { %v1055_v40 = vrot.slane %v1052_v38, 4  ;;  %v1054_v41 = vrot.slane %v1052_v38, 3  ;;  %v1038_v46 = vadd.f32 %v1034_v42, %v3568_v24  ;;  %v1039_v47 = vadd.f32 %v1035_v45, %v3570_v25 }
0x1099   :  { %1058 = vrot.lane.b32.xlu1 %v1055_v40, %s3482_s0  ;;  %1056 = vrot.lane.b32.xlu0 %v1054_v41, %s3482_s0  ;;  %v2873_v48 = vmul.f32 -1.442695, %v1038_v46  ;;  %v2874_v49 = vmul.f32 -1.442695, %v1039_v47 }
0x109b   :  { %3274 = vpow2.f32 %v2873_v48 }
0x109c   :  { %3276 = vpow2.f32 %v2874_v49 }
0x10a8   :  { %v3275_v50 = vpop.eup %3274 }
0x10a9   :  { %v3277_v51 = vpop.eup %3276  ;;  %v1046_v52 = vadd.f32 1.0, %v3275_v50 }
0x10aa   :  { %v1047_v53 = vadd.f32 1.0, %v3277_v51 }
0x10ab   :  { %3278 = vrcp.f32 %v1046_v52 }
0x10ac   :  { %3280 = vrcp.f32 %v1047_v53 }
0x10b8   :  { %v3279_v54 = vpop.eup %3278 }
0x10b9   :  { %v3281_v57 = vpop.eup %3280 }
0x110b   :  { %v1059_v58 = vpop.permute.xlu1 %1058  ;;  %v1057_v59 = vpop.permute.xlu0 %1056 }
0x110c   :  { %v1063_v60 = vmul.f32 %v3281_v57, %v1059_v58  ;;  %v1062_v61 = vmul.f32 %v3279_v54, %v1057_v59 }
0x110e   :  { %1068 = vrot.lane.b32.xlu1 %v1063_v60, %s3482_s0  ;;  %1066 = vrot.lane.b32.xlu0 %v1062_v61, %s3482_s0 }
0x1180   :  { %v1069_v62 = vpop.permute.xlu1 %1068  ;;  %v1067_v63 = vpop.permute.xlu0 %1066 }
0x1181   :  { %v1073_v1 = vadd.f32 %v1069_v62, %v3570_v25  ;;  %v1072_v3 = vadd.f32 %v1067_v63, %v3568_v24 }
0x1183   :  { %3282 = vtanh.f32 %v1073_v1 }
0x1184   :  { %3284 = vtanh.f32 %v1072_v3 }
0x1190   :  { %v3283_v5 = vpop.eup %3282 }
0x1191   :  { %v3285_v6 = vpop.eup %3284  ;;  %v1079_v8 = vrot.slane %v3283_v5, 1 }
0x1192   :  { %v1078_v9 = vrot.slane %v3285_v6, 1 }
0x1193   :  { %v1083_v11 = vsub.f32 %v3718_v26, %v1079_v8 }
0x1194   :  { %v1082_v12 = vsub.f32 %v3720_v28, %v1078_v9 }
0x1195   :  { %v1087_v13 = vrot.slane %v1083_v11, 7 }
0x1196   :  { %v1086_v15 = vrot.slane %v1082_v12, 7 }
0x1197   :  { %1090 = vrot.lane.b32.xlu1 %v1087_v13, %s3483_s1 }
0x1198   :  { %1088 = vrot.lane.b32.xlu0 %v1086_v15, %s3483_s1 }
0x1209   :  { %v1091_v17 = vpop.permute.xlu1 %1090 }
0x120a   :  { %v1095_v18 = vmul.f32 %v3281_v57, %v1091_v17  ;;  %v1089_v20 = vpop.permute.xlu0 %1088 }
0x120b   :  { %v1094_v21 = vmul.f32 %v3279_v54, %v1089_v20 }
0x120c   :  { %1100 = vrot.lane.b32.xlu1 %v1095_v18, %s3484_s21 }
0x120d   :  { %1098 = vrot.lane.b32.xlu0 %v1094_v21, %s3484_s21 }
0x127e   :  { %v1101_v22 = vpop.permute.xlu1 %1100 }
0x127f   :  { %v3752_v23 = vadd.f32 %v3283_v5, %v1101_v22  ;;  %v1099_v27 = vpop.permute.xlu0 %1098 }
0x1280   :  { %v3754_v30 = vadd.f32 %v3285_v6, %v1099_v27 }
0x1281   :  { %v1118_v32 = vrot.slane %v3752_v23, 4 }
0x1282   :  { %v1117_v33 = vrot.slane %v3754_v30, 5 }
0x1284   :  { %v1119_v35 = vsel %vm316_vm2, %v1118_v32, %v1117_v33 }
0x1285   :  { %1120 = vrot.lane.b32.xlu0 %v1119_v35, %s3482_s0 }
0x12f7   :  { %v1121_v37 = vpop.permute.xlu0 %1120 }
0x12f8   :  { %3089 = vmatmul.mubr.msk.f32.vlgmr.msra.gmra.mxu1 %vm159_vm3, %v1121_v37  ;;  %v3795_v37 = vld [vmem:[#allocation6 + $0x28] sm:$0xff] }
0x12f9   :  { %3103 = vmatpush3.msra.mxu1 %v3516_v2  ;;  %3110 = vmatprep.mubr.msk.f32.mxu1 %vm3481_vm0, %v3480_v0 }
0x12fa   :  { %3104 = vmatprep.subr.mxu1 %v3480_v0 }
0x12fb   :  { %3105 = vmatpush3.msra.mxu1 %v3519_v4 }
0x12fc   :  { %3106 = vmatprep.subr.mxu1 %v3480_v0 }
0x12fd   :  { %3107 = vmatpush3.msra.mxu1 %v3523_v7 }
0x12fe   :  { %3108 = vmatprep.subr.mxu1 %v3480_v0 }
0x12ff   :  { %3109 = vmatpush3.msra.mxu1 %v3528_v10 }
0x1300   :  { %3124 = vmatprep.subr.mxu1 %v3480_v0 }
0x13b8   :  { %v1190_v38 = vpop.f32.mrf.mxu1 }
0x13b9   :  { %v1213_v2 = vadd.f32 %v1190_v38, %v3561_v16  ;;  %v1195_v4 = vrot.slane %v1190_v38, 2  ;;  %v1196_v42 = vrot.slane %v1190_v38, 3  ;;  %v3801_v38 = vld [vmem:[#allocation6 + $0x20] sm:$0xff] }
0x13ba   :  { %v3090_v39 = vpop.f32.mrf.mxu1 }
0x13bb   :  { %v1216_v40 = vrot.slane %v1213_v2, 3  ;;  %v1215_v41 = vrot.slane %v1213_v2, 2  ;;  %v1199_v7 = vadd.f32 %v1195_v4, %v3568_v24  ;;  %v1200_v45 = vadd.f32 %v1196_v42, %v3570_v25  ;;  %v3805_v2 = vld [vmem:[#allocation6 + $0x18] sm:$0xff]  ;;  %v3809_v39 = vld [vmem:[#allocation6 + $0x10] sm:$0xff] }
0x13bd   :  { %1219 = vrot.lane.b32.xlu0 %v1216_v40, %s3482_s0  ;;  %1217 = vrot.lane.b32.xlu1 %v1215_v41, %s3482_s0  ;;  %v2876_v46 = vmul.f32 -1.442695, %v1199_v7  ;;  %v2877_v10 = vmul.f32 -1.442695, %v1200_v45 }
0x13bf   :  { %3286 = vpow2.f32 %v2876_v46 }
0x13c0   :  { %3288 = vpow2.f32 %v2877_v10 }
0x13cc   :  { %v3287_v47 = vpop.eup %3286 }
0x13cd   :  { %v3289_v48 = vpop.eup %3288  ;;  %v1207_v49 = vadd.f32 1.0, %v3287_v47 }
0x13ce   :  { %v1208_v50 = vadd.f32 1.0, %v3289_v48 }
0x13cf   :  { %3290 = vrcp.f32 %v1207_v49 }
0x13d0   :  { %3292 = vrcp.f32 %v1208_v50 }
0x13dc   :  { %v3291_v51 = vpop.eup %3290 }
0x13dd   :  { %v3293_v52 = vpop.eup %3292 }
0x142f   :  { %v1220_v53 = vpop.permute.xlu0 %1219  ;;  %v1218_v54 = vpop.permute.xlu1 %1217 }
0x1430   :  { %v1224_v57 = vmul.f32 %v3293_v52, %v1220_v53  ;;  %v1223_v58 = vmul.f32 %v3291_v51, %v1218_v54 }
0x1432   :  { %1229 = vrot.lane.b32.xlu0 %v1224_v57, %s3482_s0  ;;  %1227 = vrot.lane.b32.xlu1 %v1223_v58, %s3482_s0 }
0x14a4   :  { %v1230_v59 = vpop.permute.xlu0 %1229  ;;  %v1228_v60 = vpop.permute.xlu1 %1227 }
0x14a5   :  { %v1234_v61 = vadd.f32 %v1230_v59, %v3570_v25  ;;  %v1233_v62 = vadd.f32 %v1228_v60, %v3568_v24 }
0x14a7   :  { %3294 = vtanh.f32 %v1234_v61 }
0x14a8   :  { %3296 = vtanh.f32 %v1233_v62 }
0x14b4   :  { %v3295_v63 = vpop.eup %3294 }
0x14b5   :  { %v3297_v1 = vpop.eup %3296  ;;  %v1240_v3 = vrot.slane %v3295_v63, 1 }
0x14b6   :  { %v1239_v5 = vrot.slane %v3297_v1, 1 }
0x14b7   :  { %v1244_v6 = vsub.f32 %v3752_v23, %v1240_v3 }
0x14b8   :  { %v1243_v8 = vsub.f32 %v3754_v30, %v1239_v5 }
0x14b9   :  { %v1248_v9 = vrot.slane %v1244_v6, 7 }
0x14ba   :  { %v1247_v11 = vrot.slane %v1243_v8, 7 }
0x14bb   :  { %1251 = vrot.lane.b32.xlu0 %v1248_v9, %s3483_s1 }
0x14bc   :  { %1249 = vrot.lane.b32.xlu1 %v1247_v11, %s3483_s1 }
0x152d   :  { %v1252_v12 = vpop.permute.xlu0 %1251 }
0x152e   :  { %v1256_v13 = vmul.f32 %v3293_v52, %v1252_v12  ;;  %v1250_v15 = vpop.permute.xlu1 %1249 }
0x152f   :  { %v1255_v17 = vmul.f32 %v3291_v51, %v1250_v15 }
0x1530   :  { %1261 = vrot.lane.b32.xlu0 %v1256_v13, %s3484_s21 }
0x1531   :  { %1259 = vrot.lane.b32.xlu1 %v1255_v17, %s3484_s21 }
0x15a2   :  { %v1262_v18 = vpop.permute.xlu0 %1261 }
0x15a3   :  { %v3786_v20 = vadd.f32 %v3295_v63, %v1262_v18  ;;  %v1260_v21 = vpop.permute.xlu1 %1259 }
0x15a4   :  { %v3788_v22 = vadd.f32 %v3297_v1, %v1260_v21 }
0x15a5   :  { %v1279_v27 = vrot.slane %v3786_v20, 5 }
0x15a6   :  { %v1278_v32 = vrot.slane %v3788_v22, 6 }
0x15a8   :  { %v1280_v33 = vsel %vm316_vm2, %v1279_v27, %v1278_v32 }
0x15a9   :  { %1281 = vrot.lane.b32.xlu1 %v1280_v33, %s3482_s0 }
0x161b   :  { %v1282_v35 = vpop.permute.xlu1 %1281 }
0x161c   :  { %3100 = vmatmul.mubr.msk.f32.vlgmr.msra.gmra.mxu0 %vm159_vm3, %v1282_v35 }
0x161d   :  { %3114 = vmatpush3.msra.mxu0 %v3795_v37  ;;  %3121 = vmatprep.mubr.msk.f32.mxu0 %vm3481_vm0, %v3480_v0 }
0x161e   :  { %3115 = vmatprep.subr.mxu0 %v3480_v0 }
0x161f   :  { %3116 = vmatpush3.msra.mxu0 %v3801_v38 }
0x1620   :  { %3117 = vmatprep.subr.mxu0 %v3480_v0 }
0x1621   :  { %3118 = vmatpush3.msra.mxu0 %v3805_v2 }
0x1622   :  { %3119 = vmatprep.subr.mxu0 %v3480_v0 }
0x1623   :  { %3120 = vmatpush3.msra.mxu0 %v3809_v39 }
0x1624   :  { %3135 = vmatprep.subr.mxu0 %v3480_v0 }
0x16dc   :  { %v1351_v40 = vpop.f32.mrf.mxu0 }
0x16dd   :  { %v1374_v41 = vadd.f32 %v1351_v40, %v3561_v16  ;;  %v1356_v45 = vrot.slane %v1351_v40, 1  ;;  %v1357_v46 = vrot.slane %v1351_v40, 2 }
0x16de   :  { %v3101_v4 = vpop.f32.mrf.mxu0 }
0x16df   :  { %v1377_v42 = vrot.slane %v1374_v41, 2  ;;  %v1376_v7 = vrot.slane %v1374_v41, 1  ;;  %v1360_v10 = vadd.f32 %v1356_v45, %v3568_v24  ;;  %v1361_v47 = vadd.f32 %v1357_v46, %v3570_v25 }
0x16e1   :  { %1380 = vrot.lane.b32.xlu1 %v1377_v42, %s3482_s0  ;;  %1378 = vrot.lane.b32.xlu0 %v1376_v7, %s3482_s0  ;;  %v2879_v48 = vmul.f32 -1.442695, %v1360_v10  ;;  %v2880_v49 = vmul.f32 -1.442695, %v1361_v47 }
0x16e3   :  { %3298 = vpow2.f32 %v2879_v48 }
0x16e4   :  { %3300 = vpow2.f32 %v2880_v49 }
0x16f0   :  { %v3299_v50 = vpop.eup %3298 }
0x16f1   :  { %v3301_v51 = vpop.eup %3300  ;;  %v1368_v52 = vadd.f32 1.0, %v3299_v50 }
0x16f2   :  { %v1369_v53 = vadd.f32 1.0, %v3301_v51 }
0x16f3   :  { %3302 = vrcp.f32 %v1368_v52 }
0x16f4   :  { %3304 = vrcp.f32 %v1369_v53 }
0x1700   :  { %v3303_v54 = vpop.eup %3302 }
0x1701   :  { %v3305_v57 = vpop.eup %3304 }
0x1753   :  { %v1381_v58 = vpop.permute.xlu1 %1380  ;;  %v1379_v59 = vpop.permute.xlu0 %1378 }
0x1754   :  { %v1385_v60 = vmul.f32 %v3305_v57, %v1381_v58  ;;  %v1384_v61 = vmul.f32 %v3303_v54, %v1379_v59 }
0x1756   :  { %1390 = vrot.lane.b32.xlu1 %v1385_v60, %s3482_s0  ;;  %1388 = vrot.lane.b32.xlu0 %v1384_v61, %s3482_s0 }
0x17c8   :  { %v1391_v62 = vpop.permute.xlu1 %1390  ;;  %v1389_v63 = vpop.permute.xlu0 %1388 }
0x17c9   :  { %v1395_v1 = vadd.f32 %v1391_v62, %v3570_v25  ;;  %v1394_v3 = vadd.f32 %v1389_v63, %v3568_v24 }
0x17cb   :  { %3306 = vtanh.f32 %v1395_v1 }
0x17cc   :  { %3308 = vtanh.f32 %v1394_v3 }
0x17d8   :  { %v3307_v5 = vpop.eup %3306 }
0x17d9   :  { %v3309_v6 = vpop.eup %3308  ;;  %v1401_v8 = vrot.slane %v3307_v5, 1 }
0x17da   :  { %v1400_v9 = vrot.slane %v3309_v6, 1 }
0x17db   :  { %v1405_v11 = vsub.f32 %v3786_v20, %v1401_v8 }
0x17dc   :  { %v1404_v12 = vsub.f32 %v3788_v22, %v1400_v9 }
0x17dd   :  { %v1409_v13 = vrot.slane %v1405_v11, 7 }
0x17de   :  { %v1408_v15 = vrot.slane %v1404_v12, 7 }
0x17df   :  { %1412 = vrot.lane.b32.xlu1 %v1409_v13, %s3483_s1 }
0x17e0   :  { %1410 = vrot.lane.b32.xlu0 %v1408_v15, %s3483_s1 }
0x1851   :  { %v1413_v17 = vpop.permute.xlu1 %1412 }
0x1852   :  { %v1417_v25 = vmul.f32 %v3305_v57, %v1413_v17  ;;  %v1411_v18 = vpop.permute.xlu0 %1410 }
0x1853   :  { %v1416_v24 = vmul.f32 %v3303_v54, %v1411_v18 }
0x1854   :  { %1422 = vrot.lane.b32.xlu1 %v1417_v25, %s3484_s21 }
0x1855   :  { %1420 = vrot.lane.b32.xlu0 %v1416_v24, %s3484_s21 }
0x18c6   :  { %v1423_v21 = vpop.permute.xlu1 %1422 }
0x18c7   :  { %v3828_v27 = vadd.f32 %v3307_v5, %v1423_v21  ;;  %v1421_v32 = vpop.permute.xlu0 %1420 }
0x18c8   :  { %v3830_v33 = vadd.f32 %v3309_v6, %v1421_v32 }
0x18c9   :  { %v1440_v35 = vrot.slane %v3828_v27, 6 }
0x18ca   :  { %v1439_v40 = vrot.slane %v3830_v33, 7 }
0x18cc   :  { %v1441_v41 = vsel %vm316_vm2, %v1440_v35, %v1439_v40 }
0x18cd   :  { %1442 = vrot.lane.b32.xlu0 %v1441_v41, %s3482_s0 }
0x193f   :  { %v1443_v4 = vpop.permute.xlu0 %1442 }
0x1940   :  { %3111 = vmatmul.mubr.msk.f32.vlgmr.msra.gmra.mxu1 %vm159_vm3, %v1443_v4 }
0x1941   :  { %3125 = vmatpush3.msra.mxu1 %v3795_v37  ;;  %3132 = vmatprep.mubr.msk.f32.mxu1 %vm3481_vm0, %v3480_v0 }
0x1942   :  { %3126 = vmatprep.subr.mxu1 %v3480_v0 }
0x1943   :  { %3127 = vmatpush3.msra.mxu1 %v3801_v38 }
0x1944   :  { %3128 = vmatprep.subr.mxu1 %v3480_v0 }
0x1945   :  { %3129 = vmatpush3.msra.mxu1 %v3805_v2 }
0x1946   :  { %3130 = vmatprep.subr.mxu1 %v3480_v0 }
0x1947   :  { %3131 = vmatpush3.msra.mxu1 %v3809_v39 }
0x1948   :  { %3146 = vmatprep.subr.mxu1 %v3480_v0 }
0x1a00   :  { %v1512_v42 = vpop.f32.mrf.mxu1 }
0x1a01   :  { %v1534_v7 = vadd.f32 %v1512_v42, %v3561_v16  ;;  %v1517_v10 = vrot.slane %v1512_v42, 1  ;;  %v1520_v47 = vadd.f32 %v1512_v42, %v3559_v14 }
0x1a02   :  { %v3112_v45 = vpop.f32.mrf.mxu1 }
0x1a03   :  { %1537 = vrot.lane.b32.xlu0 %v1534_v7, %s3482_s0  ;;  %v1536_v46 = vrot.slane %v1534_v7, 1  ;;  %v1521_v48 = vadd.f32 %v1517_v10, %v3563_v19  ;;  %v2882_v49 = vmul.f32 -1.442695, %v1520_v47 }
0x1a05   :  { %1539 = vrot.lane.b32.xlu1 %v1536_v46, %s3482_s0  ;;  %v2883_v50 = vmul.f32 -1.442695, %v1521_v48  ;;  %3310 = vpow2.f32 %v2882_v49 }
0x1a07   :  { %3312 = vpow2.f32 %v2883_v50 }
0x1a12   :  { %v3311_v51 = vpop.eup %3310 }
0x1a13   :  { %v1528_v53 = vadd.f32 1.0, %v3311_v51 }
0x1a14   :  { %v3313_v52 = vpop.eup %3312 }
0x1a15   :  { %v1529_v54 = vadd.f32 1.0, %v3313_v52  ;;  %3314 = vrcp.f32 %v1528_v53 }
0x1a17   :  { %3316 = vrcp.f32 %v1529_v54 }
0x1a22   :  { %v3315_v57 = vpop.eup %3314 }
0x1a24   :  { %v3317_v60 = vpop.eup %3316 }
0x1a75   :  { %v1538_v58 = vpop.permute.xlu0 %1537 }
0x1a76   :  { %v1543_v59 = vmul.f32 %v3315_v57, %v1538_v58 }
0x1a77   :  { %v1540_v61 = vpop.permute.xlu1 %1539 }
0x1a78   :  { %v1544_v62 = vmul.f32 %v3317_v60, %v1540_v61  ;;  %1547 = vrot.lane.b32.xlu0 %v1543_v59, %s3482_s0 }
0x1a7a   :  { %1549 = vrot.lane.b32.xlu1 %v1544_v62, %s3482_s0 }
0x1aea   :  { %v1548_v63 = vpop.permute.xlu0 %1547 }
0x1aeb   :  { %v1553_v1 = vadd.f32 %v1548_v63, %v3559_v14 }
0x1aec   :  { %v1550_v3 = vpop.permute.xlu1 %1549 }
0x1aed   :  { %3318 = vtanh.f32 %v1553_v1  ;;  %v1554_v5 = vadd.f32 %v1550_v3, %v3563_v19 }
0x1aef   :  { %3320 = vtanh.f32 %v1554_v5 }
0x1afa   :  { %v3319_v6 = vpop.eup %3318 }
0x1afb   :  { %v1559_v8 = vrot.slane %v3319_v6, 1 }
0x1afc   :  { %v3321_v9 = vpop.eup %3320 }
0x1afd   :  { %v1563_v11 = vsub.f32 %v3830_v33, %v1559_v8  ;;  %v1560_v12 = vrot.slane %v3321_v9, 1 }
0x1aff   :  { %v1567_v13 = vrot.slane %v1563_v11, 7  ;;  %v1564_v15 = vsub.f32 %v3828_v27, %v1560_v12 }
0x1b01   :  { %1569 = vrot.lane.b32.xlu0 %v1567_v13, %s3483_s1  ;;  %v1568_v17 = vrot.slane %v1564_v15, 7 }
0x1b03   :  { %1571 = vrot.lane.b32.xlu1 %v1568_v17, %s3483_s1 }
0x1b73   :  { %v1570_v25 = vpop.permute.xlu0 %1569 }
0x1b74   :  { %v1575_v18 = vmul.f32 %v3315_v57, %v1570_v25 }
0x1b75   :  { %v1572_v24 = vpop.permute.xlu1 %1571 }
0x1b76   :  { %v1576_v21 = vmul.f32 %v3317_v60, %v1572_v24  ;;  %1579 = vrot.lane.b32.xlu0 %v1575_v18, %s3484_s21 }
0x1b78   :  { %1581 = vrot.lane.b32.xlu1 %v1576_v21, %s3484_s21 }
0x1be8   :  { %v1580_v32 = vpop.permute.xlu0 %1579 }
0x1be9   :  { %v3864_v41 = vadd.f32 %v3319_v6, %v1580_v32 }
0x1bea   :  { %v1582_v35 = vpop.permute.xlu1 %1581 }
0x1beb   :  { %v3862_v40 = vadd.f32 %v3321_v9, %v1582_v35 }
0x1bed   :  { %v1597_v4 = vrot.slane %v3862_v40, 7 }
0x1bef   :  { %v1598_v42 = vsel %vm316_vm2, %v1597_v4, %v3864_v41 }
0x1bf0   :  { %1599 = vrot.lane.b32.xlu1 %v1598_v42, %s3482_s0 }
0x1c62   :  { %v1600_v7 = vpop.permute.xlu1 %1599 }
0x1c63   :  { %3122 = vmatmul.mubr.msk.f32.vlgmr.msra.gmra.mxu0 %vm159_vm3, %v1600_v7 }
0x1c64   :  { %3136 = vmatpush3.msra.mxu0 %v3795_v37  ;;  %3143 = vmatprep.mubr.msk.f32.mxu0 %vm3481_vm0, %v3480_v0 }
0x1c65   :  { %3137 = vmatprep.subr.mxu0 %v3480_v0 }
0x1c66   :  { %3138 = vmatpush3.msra.mxu0 %v3801_v38 }
0x1c67   :  { %3139 = vmatprep.subr.mxu0 %v3480_v0 }
0x1c68   :  { %3140 = vmatpush3.msra.mxu0 %v3805_v2 }
0x1c69   :  { %3141 = vmatprep.subr.mxu0 %v3480_v0 }
0x1c6a   :  { %3142 = vmatpush3.msra.mxu0 %v3809_v39 }
0x1c6b   :  { %3157 = vmatprep.subr.mxu0 %v3480_v0 }
0x1d23   :  { %v1669_v45 = vpop.f32.mrf.mxu0 }
0x1d24   :  { %v1691_v46 = vadd.f32 %v1669_v45, %v3561_v16  ;;  %v1674_v48 = vrot.slane %v1669_v45, 7  ;;  %v1678_v49 = vadd.f32 %v1669_v45, %v3563_v19 }
0x1d25   :  { %v3123_v10 = vpop.f32.mrf.mxu0 }
0x1d26   :  { %1696 = vrot.lane.b32.xlu1 %v1691_v46, %s3482_s0  ;;  %v1693_v47 = vrot.slane %v1691_v46, 7  ;;  %v1677_v50 = vadd.f32 %v1674_v48, %v3559_v14  ;;  %v2886_v51 = vmul.f32 -1.442695, %v1678_v49 }
0x1d28   :  { %1694 = vrot.lane.b32.xlu0 %v1693_v47, %s3482_s0  ;;  %v2885_v52 = vmul.f32 -1.442695, %v1677_v50  ;;  %3322 = vpow2.f32 %v2886_v51 }
0x1d2a   :  { %3324 = vpow2.f32 %v2885_v52 }
0x1d35   :  { %v3323_v53 = vpop.eup %3322 }
0x1d36   :  { %v1686_v57 = vadd.f32 1.0, %v3323_v53 }
0x1d37   :  { %v3325_v54 = vpop.eup %3324 }
0x1d38   :  { %v1685_v58 = vadd.f32 1.0, %v3325_v54  ;;  %3326 = vrcp.f32 %v1686_v57 }
0x1d3a   :  { %3328 = vrcp.f32 %v1685_v58 }
0x1d45   :  { %v3327_v59 = vpop.eup %3326 }
0x1d47   :  { %v3329_v62 = vpop.eup %3328 }
0x1d98   :  { %v1697_v60 = vpop.permute.xlu1 %1696 }
0x1d99   :  { %v1701_v61 = vmul.f32 %v3327_v59, %v1697_v60 }
0x1d9a   :  { %v1695_v63 = vpop.permute.xlu0 %1694 }
0x1d9b   :  { %v1700_v1 = vmul.f32 %v3329_v62, %v1695_v63  ;;  %1706 = vrot.lane.b32.xlu1 %v1701_v61, %s3482_s0 }
0x1d9d   :  { %1704 = vrot.lane.b32.xlu0 %v1700_v1, %s3482_s0 }
0x1e0d   :  { %v1707_v3 = vpop.permute.xlu1 %1706 }
0x1e0e   :  { %v1711_v5 = vadd.f32 %v1707_v3, %v3563_v19 }
0x1e0f   :  { %v1705_v6 = vpop.permute.xlu0 %1704 }
0x1e10   :  { %3330 = vtanh.f32 %v1711_v5  ;;  %v1710_v8 = vadd.f32 %v1705_v6, %v3559_v14 }
0x1e12   :  { %3332 = vtanh.f32 %v1710_v8 }
0x1e1d   :  { %v3331_v9 = vpop.eup %3330 }
0x1e1e   :  { %v1717_v11 = vrot.slane %v3331_v9, 1 }
0x1e1f   :  { %v3333_v12 = vpop.eup %3332 }
0x1e20   :  { %v1721_v13 = vsub.f32 %v3862_v40, %v1717_v11  ;;  %v1716_v15 = vrot.slane %v3333_v12, 1 }
0x1e22   :  { %v1725_v17 = vrot.slane %v1721_v13, 7  ;;  %v1720_v25 = vsub.f32 %v3864_v41, %v1716_v15 }
0x1e24   :  { %1728 = vrot.lane.b32.xlu1 %v1725_v17, %s3483_s1  ;;  %v1724_v18 = vrot.slane %v1720_v25, 7 }
0x1e26   :  { %1726 = vrot.lane.b32.xlu0 %v1724_v18, %s3483_s1 }
0x1e96   :  { %v1729_v24 = vpop.permute.xlu1 %1728 }
0x1e97   :  { %v1733_v21 = vmul.f32 %v3327_v59, %v1729_v24 }
0x1e98   :  { %v1727_v32 = vpop.permute.xlu0 %1726 }
0x1e99   :  { %v1732_v35 = vmul.f32 %v3329_v62, %v1727_v32  ;;  %1738 = vrot.lane.b32.xlu1 %v1733_v21, %s3484_s21 }
0x1e9b   :  { %1736 = vrot.lane.b32.xlu0 %v1732_v35, %s3484_s21 }
0x1f0b   :  { %v1739_v4 = vpop.permute.xlu1 %1738 }
0x1f0c   :  { %v3898_v45 = vadd.f32 %v3331_v9, %v1739_v4 }
0x1f0d   :  { %v1737_v42 = vpop.permute.xlu0 %1736 }
0x1f0e   :  { %v3896_v7 = vadd.f32 %v3333_v12, %v1737_v42 }
0x1f10   :  { %v1754_v46 = vrot.slane %v3896_v7, 1 }
0x1f12   :  { %v1755_v10 = vsel %vm316_vm2, %v3898_v45, %v1754_v46 }
0x1f13   :  { %1756 = vrot.lane.b32.xlu0 %v1755_v10, %s3482_s0 }
0x1f85   :  { %v1757_v47 = vpop.permute.xlu0 %1756 }
0x1f86   :  { %3133 = vmatmul.mubr.msk.f32.vlgmr.msra.gmra.mxu1 %vm159_vm3, %v1757_v47 }
0x1f87   :  { %3147 = vmatpush3.msra.mxu1 %v3795_v37  ;;  %3154 = vmatprep.mubr.msk.f32.mxu1 %vm3481_vm0, %v3480_v0 }
0x1f88   :  { %3148 = vmatprep.subr.mxu1 %v3480_v0 }
0x1f89   :  { %3149 = vmatpush3.msra.mxu1 %v3801_v38 }
0x1f8a   :  { %3150 = vmatprep.subr.mxu1 %v3480_v0 }
0x1f8b   :  { %3151 = vmatpush3.msra.mxu1 %v3805_v2 }
0x1f8c   :  { %3152 = vmatprep.subr.mxu1 %v3480_v0 }
0x1f8d   :  { %3153 = vmatpush3.msra.mxu1 %v3809_v39 }
0x1f8e   :  { %3168 = vmatprep.subr.mxu1 %v3480_v0 }
0x2046   :  { %v1826_v48 = vpop.f32.mrf.mxu1 }
0x2047   :  { %v1849_v49 = vadd.f32 %v1826_v48, %v3561_v16  ;;  %v1831_v53 = vrot.slane %v1826_v48, 6  ;;  %v1832_v54 = vrot.slane %v1826_v48, 7 }
0x2048   :  { %v3134_v50 = vpop.f32.mrf.mxu1 }
0x2049   :  { %v1852_v51 = vrot.slane %v1849_v49, 7  ;;  %v1851_v52 = vrot.slane %v1849_v49, 6  ;;  %v1835_v57 = vadd.f32 %v1831_v53, %v3559_v14  ;;  %v1836_v58 = vadd.f32 %v1832_v54, %v3563_v19 }
0x204b   :  { %1855 = vrot.lane.b32.xlu0 %v1852_v51, %s3482_s0  ;;  %1853 = vrot.lane.b32.xlu1 %v1851_v52, %s3482_s0  ;;  %v2888_v59 = vmul.f32 -1.442695, %v1835_v57  ;;  %v2889_v60 = vmul.f32 -1.442695, %v1836_v58 }
0x204d   :  { %3334 = vpow2.f32 %v2888_v59 }
0x204e   :  { %3336 = vpow2.f32 %v2889_v60 }
0x205a   :  { %v3335_v61 = vpop.eup %3334 }
0x205b   :  { %v3337_v62 = vpop.eup %3336  ;;  %v1843_v63 = vadd.f32 1.0, %v3335_v61 }
0x205c   :  { %v1844_v1 = vadd.f32 1.0, %v3337_v62 }
0x205d   :  { %3338 = vrcp.f32 %v1843_v63 }
0x205e   :  { %3340 = vrcp.f32 %v1844_v1 }
0x206a   :  { %v3339_v3 = vpop.eup %3338 }
0x206b   :  { %v3341_v5 = vpop.eup %3340 }
0x20bd   :  { %v1856_v6 = vpop.permute.xlu0 %1855  ;;  %v1854_v8 = vpop.permute.xlu1 %1853 }
0x20be   :  { %v1860_v9 = vmul.f32 %v3341_v5, %v1856_v6  ;;  %v1859_v11 = vmul.f32 %v3339_v3, %v1854_v8 }
0x20c0   :  { %1865 = vrot.lane.b32.xlu0 %v1860_v9, %s3482_s0  ;;  %1863 = vrot.lane.b32.xlu1 %v1859_v11, %s3482_s0 }
0x2132   :  { %v1866_v12 = vpop.permute.xlu0 %1865  ;;  %v1864_v13 = vpop.permute.xlu1 %1863 }
0x2133   :  { %v1870_v15 = vadd.f32 %v1866_v12, %v3563_v19  ;;  %v1869_v17 = vadd.f32 %v1864_v13, %v3559_v14 }
0x2135   :  { %3342 = vtanh.f32 %v1870_v15 }
0x2136   :  { %3344 = vtanh.f32 %v1869_v17 }
0x2142   :  { %v3343_v25 = vpop.eup %3342 }
0x2143   :  { %v3345_v18 = vpop.eup %3344  ;;  %v1876_v24 = vrot.slane %v3343_v25, 1 }
0x2144   :  { %v1875_v21 = vrot.slane %v3345_v18, 1 }
0x2145   :  { %v1880_v32 = vsub.f32 %v3898_v45, %v1876_v24 }
0x2146   :  { %v1879_v35 = vsub.f32 %v3896_v7, %v1875_v21 }
0x2147   :  { %v1884_v4 = vrot.slane %v1880_v32, 7 }
0x2148   :  { %v1883_v42 = vrot.slane %v1879_v35, 7 }
0x2149   :  { %1887 = vrot.lane.b32.xlu0 %v1884_v4, %s3483_s1 }
0x214a   :  { %1885 = vrot.lane.b32.xlu1 %v1883_v42, %s3483_s1 }
0x21bb   :  { %v1888_v46 = vpop.permute.xlu0 %1887 }
0x21bc   :  { %v1892_v10 = vmul.f32 %v3341_v5, %v1888_v46  ;;  %v1886_v47 = vpop.permute.xlu1 %1885 }
0x21bd   :  { %v1891_v48 = vmul.f32 %v3339_v3, %v1886_v47 }
0x21be   :  { %1897 = vrot.lane.b32.xlu0 %v1892_v10, %s3484_s21 }
0x21bf   :  { %1895 = vrot.lane.b32.xlu1 %v1891_v48, %s3484_s21 }
0x2230   :  { %v1898_v49 = vpop.permute.xlu0 %1897 }
0x2231   :  { %v3930_v50 = vadd.f32 %v3343_v25, %v1898_v49  ;;  %v1896_v51 = vpop.permute.xlu1 %1895 }
0x2232   :  { %v3932_v52 = vadd.f32 %v3345_v18, %v1896_v51 }
0x2233   :  { %v1914_v53 = vrot.slane %v3930_v50, 1 }
0x2234   :  { %v1913_v54 = vrot.slane %v3932_v52, 2 }
0x2236   :  { %v1915_v57 = vsel %vm316_vm2, %v1914_v53, %v1913_v54 }
0x2237   :  { %1916 = vrot.lane.b32.xlu1 %v1915_v57, %s3482_s0 }
0x22a9   :  { %v1917_v58 = vpop.permute.xlu1 %1916 }
0x22aa   :  { %3144 = vmatmul.mubr.msk.f32.vlgmr.msra.gmra.mxu0 %vm159_vm3, %v1917_v58 }
0x22ab   :  { %3158 = vmatpush3.msra.mxu0 %v3795_v37  ;;  %3165 = vmatprep.mubr.msk.f32.mxu0 %vm3481_vm0, %v3480_v0 }
0x22ac   :  { %3159 = vmatprep.subr.mxu0 %v3480_v0 }
0x22ad   :  { %3160 = vmatpush3.msra.mxu0 %v3801_v38 }
0x22ae   :  { %3161 = vmatprep.subr.mxu0 %v3480_v0 }
0x22af   :  { %3162 = vmatpush3.msra.mxu0 %v3805_v2 }
0x22b0   :  { %3163 = vmatprep.subr.mxu0 %v3480_v0 }
0x22b1   :  { %3164 = vmatpush3.msra.mxu0 %v3809_v39 }
0x22b2   :  { %3179 = vmatprep.subr.mxu0 %v3480_v0 }
0x236a   :  { %v1986_v59 = vpop.f32.mrf.mxu0 }
0x236b   :  { %v2009_v60 = vadd.f32 %v1986_v59, %v3561_v16  ;;  %v1991_v1 = vrot.slane %v1986_v59, 5  ;;  %v1992_v3 = vrot.slane %v1986_v59, 6 }
0x236c   :  { %v3145_v61 = vpop.f32.mrf.mxu0 }
0x236d   :  { %v2011_v62 = vrot.slane %v2009_v60, 5  ;;  %v2012_v63 = vrot.slane %v2009_v60, 6  ;;  %v1995_v5 = vadd.f32 %v1991_v1, %v3559_v14  ;;  %v1996_v6 = vadd.f32 %v1992_v3, %v3563_v19 }
0x236f   :  { %2015 = vrot.lane.b32.xlu1 %v2012_v63, %s3482_s0  ;;  %2013 = vrot.lane.b32.xlu0 %v2011_v62, %s3482_s0  ;;  %v2891_v8 = vmul.f32 -1.442695, %v1995_v5  ;;  %v2892_v9 = vmul.f32 -1.442695, %v1996_v6 }
0x2371   :  { %3346 = vpow2.f32 %v2891_v8 }
0x2372   :  { %3348 = vpow2.f32 %v2892_v9 }
0x237e   :  { %v3347_v11 = vpop.eup %3346 }
0x237f   :  { %v3349_v12 = vpop.eup %3348  ;;  %v2003_v13 = vadd.f32 1.0, %v3347_v11 }
0x2380   :  { %v2004_v15 = vadd.f32 1.0, %v3349_v12 }
0x2381   :  { %3350 = vrcp.f32 %v2003_v13 }
0x2382   :  { %3352 = vrcp.f32 %v2004_v15 }
0x238e   :  { %v3351_v17 = vpop.eup %3350 }
0x238f   :  { %v3353_v25 = vpop.eup %3352 }
0x23e1   :  { %v2016_v18 = vpop.permute.xlu1 %2015  ;;  %v2014_v24 = vpop.permute.xlu0 %2013 }
0x23e2   :  { %v2020_v21 = vmul.f32 %v3353_v25, %v2016_v18  ;;  %v2019_v32 = vmul.f32 %v3351_v17, %v2014_v24 }
0x23e4   :  { %2025 = vrot.lane.b32.xlu1 %v2020_v21, %s3482_s0  ;;  %2023 = vrot.lane.b32.xlu0 %v2019_v32, %s3482_s0 }
0x2456   :  { %v2026_v35 = vpop.permute.xlu1 %2025  ;;  %v2024_v4 = vpop.permute.xlu0 %2023 }
0x2457   :  { %v2030_v42 = vadd.f32 %v2026_v35, %v3563_v19  ;;  %v2029_v46 = vadd.f32 %v2024_v4, %v3559_v14 }
0x2459   :  { %3354 = vtanh.f32 %v2030_v42 }
0x245a   :  { %3356 = vtanh.f32 %v2029_v46 }
0x2466   :  { %v3355_v10 = vpop.eup %3354 }
0x2467   :  { %v3357_v47 = vpop.eup %3356  ;;  %v2036_v48 = vrot.slane %v3355_v10, 1 }
0x2468   :  { %v2035_v49 = vrot.slane %v3357_v47, 1 }
0x2469   :  { %v2040_v51 = vsub.f32 %v3930_v50, %v2036_v48 }
0x246a   :  { %v2039_v53 = vsub.f32 %v3932_v52, %v2035_v49 }
0x246b   :  { %v2044_v54 = vrot.slane %v2040_v51, 7 }
0x246c   :  { %v2043_v57 = vrot.slane %v2039_v53, 7 }
0x246d   :  { %2047 = vrot.lane.b32.xlu1 %v2044_v54, %s3483_s1 }
0x246e   :  { %2045 = vrot.lane.b32.xlu0 %v2043_v57, %s3483_s1 }
0x24df   :  { %v2048_v58 = vpop.permute.xlu1 %2047 }
0x24e0   :  { %v2052_v59 = vmul.f32 %v3353_v25, %v2048_v58  ;;  %v2046_v60 = vpop.permute.xlu0 %2045 }
0x24e1   :  { %v2051_v61 = vmul.f32 %v3351_v17, %v2046_v60 }
0x24e2   :  { %2057 = vrot.lane.b32.xlu1 %v2052_v59, %s3484_s21 }
0x24e3   :  { %2055 = vrot.lane.b32.xlu0 %v2051_v61, %s3484_s21 }
0x2554   :  { %v2058_v62 = vpop.permute.xlu1 %2057 }
0x2555   :  { %v3964_v63 = vadd.f32 %v3355_v10, %v2058_v62  ;;  %v2056_v1 = vpop.permute.xlu0 %2055 }
0x2556   :  { %v3966_v3 = vadd.f32 %v3357_v47, %v2056_v1 }
0x2557   :  { %v2074_v5 = vrot.slane %v3964_v63, 2 }
0x2558   :  { %v2073_v6 = vrot.slane %v3966_v3, 3 }
0x255a   :  { %v2075_v8 = vsel %vm316_vm2, %v2074_v5, %v2073_v6 }
0x255b   :  { %2076 = vrot.lane.b32.xlu0 %v2075_v8, %s3482_s0 }
0x25cd   :  { %v2077_v9 = vpop.permute.xlu0 %2076 }
0x25ce   :  { %3155 = vmatmul.mubr.msk.f32.vlgmr.msra.gmra.mxu1 %vm159_vm3, %v2077_v9 }
0x25cf   :  { %3169 = vmatpush3.msra.mxu1 %v3795_v37  ;;  %3176 = vmatprep.mubr.msk.f32.mxu1 %vm3481_vm0, %v3480_v0 }
0x25d0   :  { %3170 = vmatprep.subr.mxu1 %v3480_v0 }
0x25d1   :  { %3171 = vmatpush3.msra.mxu1 %v3801_v38 }
0x25d2   :  { %3172 = vmatprep.subr.mxu1 %v3480_v0 }
0x25d3   :  { %3173 = vmatpush3.msra.mxu1 %v3805_v2 }
0x25d4   :  { %3174 = vmatprep.subr.mxu1 %v3480_v0 }
0x25d5   :  { %3175 = vmatpush3.msra.mxu1 %v3809_v39 }
0x268e   :  { %v2146_v11 = vpop.f32.mrf.mxu1 }
0x268f   :  { %v2169_v12 = vadd.f32 %v2146_v11, %v3561_v16  ;;  %v2151_v25 = vrot.slane %v2146_v11, 4  ;;  %v2152_v18 = vrot.slane %v2146_v11, 5 }
0x2690   :  { %v3156_v13 = vpop.f32.mrf.mxu1 }
0x2691   :  { %v2171_v15 = vrot.slane %v2169_v12, 4  ;;  %v2172_v17 = vrot.slane %v2169_v12, 5  ;;  %v2155_v24 = vadd.f32 %v2151_v25, %v3559_v14  ;;  %v2156_v21 = vadd.f32 %v2152_v18, %v3563_v19 }
0x2693   :  { %2175 = vrot.lane.b32.xlu0 %v2172_v17, %s3482_s0  ;;  %2173 = vrot.lane.b32.xlu1 %v2171_v15, %s3482_s0  ;;  %v2894_v32 = vmul.f32 -1.442695, %v2155_v24  ;;  %v2895_v35 = vmul.f32 -1.442695, %v2156_v21 }
0x2695   :  { %3358 = vpow2.f32 %v2894_v32 }
0x2696   :  { %3360 = vpow2.f32 %v2895_v35 }
0x26a2   :  { %v3359_v4 = vpop.eup %3358 }
0x26a3   :  { %v3361_v42 = vpop.eup %3360  ;;  %v2163_v46 = vadd.f32 1.0, %v3359_v4 }
0x26a4   :  { %v2164_v10 = vadd.f32 1.0, %v3361_v42 }
0x26a5   :  { %3362 = vrcp.f32 %v2163_v46 }
0x26a6   :  { %3364 = vrcp.f32 %v2164_v10 }
0x26b2   :  { %v3363_v47 = vpop.eup %3362 }
0x26b3   :  { %v3365_v48 = vpop.eup %3364 }
0x2705   :  { %v2176_v49 = vpop.permute.xlu0 %2175  ;;  %v2174_v51 = vpop.permute.xlu1 %2173 }
0x2706   :  { %v2180_v53 = vmul.f32 %v3365_v48, %v2176_v49  ;;  %v2179_v54 = vmul.f32 %v3363_v47, %v2174_v51 }
0x2708   :  { %2185 = vrot.lane.b32.xlu0 %v2180_v53, %s3482_s0  ;;  %2183 = vrot.lane.b32.xlu1 %v2179_v54, %s3482_s0 }
0x277a   :  { %v2186_v57 = vpop.permute.xlu0 %2185  ;;  %v2184_v58 = vpop.permute.xlu1 %2183 }
0x277b   :  { %v2190_v59 = vadd.f32 %v2186_v57, %v3563_v19  ;;  %v2189_v60 = vadd.f32 %v2184_v58, %v3559_v14 }
0x277d   :  { %3366 = vtanh.f32 %v2190_v59 }
0x277e   :  { %3368 = vtanh.f32 %v2189_v60 }
0x278a   :  { %v3367_v61 = vpop.eup %3366 }
0x278b   :  { %v3369_v62 = vpop.eup %3368  ;;  %v2196_v1 = vrot.slane %v3367_v61, 1 }
0x278c   :  { %v2195_v5 = vrot.slane %v3369_v62, 1 }
0x278d   :  { %v2200_v6 = vsub.f32 %v3964_v63, %v2196_v1 }
0x278e   :  { %v2199_v8 = vsub.f32 %v3966_v3, %v2195_v5 }
0x278f   :  { %v2204_v9 = vrot.slane %v2200_v6, 7 }
0x2790   :  { %v2203_v11 = vrot.slane %v2199_v8, 7 }
0x2791   :  { %2207 = vrot.lane.b32.xlu0 %v2204_v9, %s3483_s1 }
0x2792   :  { %2205 = vrot.lane.b32.xlu1 %v2203_v11, %s3483_s1 }
0x2803   :  { %v2208_v12 = vpop.permute.xlu0 %2207 }
0x2804   :  { %v2212_v13 = vmul.f32 %v3365_v48, %v2208_v12  ;;  %v2206_v15 = vpop.permute.xlu1 %2205 }
0x2805   :  { %v2211_v17 = vmul.f32 %v3363_v47, %v2206_v15 }
0x2806   :  { %2217 = vrot.lane.b32.xlu0 %v2212_v13, %s3484_s21 }
0x2807   :  { %2215 = vrot.lane.b32.xlu1 %v2211_v17, %s3484_s21 }
0x2878   :  { %v2218_v25 = vpop.permute.xlu0 %2217 }
0x2879   :  { %v3997_v18 = vadd.f32 %v3367_v61, %v2218_v25  ;;  %v2216_v24 = vpop.permute.xlu1 %2215 }
0x287a   :  { %v3999_v21 = vadd.f32 %v3369_v62, %v2216_v24 }
0x287b   :  { %v2234_v32 = vrot.slane %v3997_v18, 3 }
0x287c   :  { %v2233_v35 = vrot.slane %v3999_v21, 4 }
0x287e   :  { %v2235_v4 = vsel %vm316_vm2, %v2234_v32, %v2233_v35 }
0x287f   :  { %2236 = vrot.lane.b32.xlu1 %v2235_v4, %s3482_s0 }
0x28f1   :  { %v2237_v42 = vpop.permute.xlu1 %2236 }
0x28f2   :  { %3166 = vmatmul.mubr.msk.f32.vlgmr.msra.gmra.mxu0 %vm159_vm3, %v2237_v42 }
0x28f3   :  { %3180 = vmatpush3.msra.mxu0 %v3795_v37  ;;  %3187 = vmatprep.mubr.msk.f32.mxu0 %vm3481_vm0, %v3480_v0 }
0x28f4   :  { %3181 = vmatprep.subr.mxu0 %v3480_v0 }
0x28f5   :  { %3182 = vmatpush3.msra.mxu0 %v3801_v38 }
0x28f6   :  { %3183 = vmatprep.subr.mxu0 %v3480_v0 }
0x28f7   :  { %3184 = vmatpush3.msra.mxu0 %v3805_v2 }
0x28f8   :  { %3185 = vmatprep.subr.mxu0 %v3480_v0 }
0x28f9   :  { %3186 = vmatpush3.msra.mxu0 %v3809_v39 }
0x29b2   :  { %v2306_v46 = vpop.f32.mrf.mxu0 }
0x29b3   :  { %v2329_v10 = vadd.f32 %v2306_v46, %v3561_v16  ;;  %v2311_v49 = vrot.slane %v2306_v46, 3  ;;  %v2312_v38 = vrot.slane %v2306_v46, 4 }
0x29b4   :  { %v3167_v47 = vpop.f32.mrf.mxu0 }
0x29b5   :  { %v2331_v37 = vrot.slane %v2329_v10, 3  ;;  %v2332_v48 = vrot.slane %v2329_v10, 4  ;;  %v2315_v51 = vadd.f32 %v2311_v49, %v3559_v14  ;;  %v2316_v2 = vadd.f32 %v2312_v38, %v3563_v19 }
0x29b7   :  { %2335 = vrot.lane.b32.xlu1 %v2332_v48, %s3482_s0  ;;  %2333 = vrot.lane.b32.xlu0 %v2331_v37, %s3482_s0  ;;  %v2897_v53 = vmul.f32 -1.442695, %v2315_v51  ;;  %v2898_v0 = vmul.f32 -1.442695, %v2316_v2 }
0x29b9   :  { %3370 = vpow2.f32 %v2897_v53 }
0x29ba   :  { %3372 = vpow2.f32 %v2898_v0 }
0x29c6   :  { %v3371_v39 = vpop.eup %3370 }
0x29c7   :  { %v3373_v54 = vpop.eup %3372  ;;  %v2323_v57 = vadd.f32 1.0, %v3371_v39 }
0x29c8   :  { %v2324_v58 = vadd.f32 1.0, %v3373_v54 }
0x29c9   :  { %3374 = vrcp.f32 %v2323_v57 }
0x29ca   :  { %3376 = vrcp.f32 %v2324_v58 }
0x29d6   :  { %v3375_v59 = vpop.eup %3374 }
0x29d7   :  { %v3377_v60 = vpop.eup %3376 }
0x2a29   :  { %v2336_v61 = vpop.permute.xlu1 %2335  ;;  %v2334_v62 = vpop.permute.xlu0 %2333 }
0x2a2a   :  { %v2340_v1 = vmul.f32 %v3377_v60, %v2336_v61  ;;  %v2339_v5 = vmul.f32 %v3375_v59, %v2334_v62 }
0x2a2c   :  { %2345 = vrot.lane.b32.xlu1 %v2340_v1, %s3482_s0  ;;  %2343 = vrot.lane.b32.xlu0 %v2339_v5, %s3482_s0 }
0x2a9e   :  { %v2346_v6 = vpop.permute.xlu1 %2345  ;;  %v2344_v8 = vpop.permute.xlu0 %2343 }
0x2a9f   :  { %v2350_v9 = vadd.f32 %v2346_v6, %v3563_v19  ;;  %v2349_v11 = vadd.f32 %v2344_v8, %v3559_v14 }
0x2aa1   :  { %3378 = vtanh.f32 %v2350_v9 }
0x2aa2   :  { %3380 = vtanh.f32 %v2349_v11 }
0x2aae   :  { %v3379_v12 = vpop.eup %3378 }
0x2aaf   :  { %v3381_v13 = vpop.eup %3380  ;;  %v2356_v15 = vrot.slane %v3379_v12, 1 }
0x2ab0   :  { %v2355_v17 = vrot.slane %v3381_v13, 1 }
0x2ab1   :  { %v2360_v25 = vsub.f32 %v3997_v18, %v2356_v15 }
0x2ab2   :  { %v2359_v24 = vsub.f32 %v3999_v21, %v2355_v17 }
0x2ab3   :  { %v2364_v32 = vrot.slane %v2360_v25, 7 }
0x2ab4   :  { %v2363_v35 = vrot.slane %v2359_v24, 7 }
0x2ab5   :  { %2367 = vrot.lane.b32.xlu1 %v2364_v32, %s3483_s1 }
0x2ab6   :  { %2365 = vrot.lane.b32.xlu0 %v2363_v35, %s3483_s1 }
0x2b27   :  { %v2368_v4 = vpop.permute.xlu1 %2367 }
0x2b28   :  { %v2372_v42 = vmul.f32 %v3377_v60, %v2368_v4  ;;  %v2366_v46 = vpop.permute.xlu0 %2365 }
0x2b29   :  { %v2371_v10 = vmul.f32 %v3375_v59, %v2366_v46 }
0x2b2a   :  { %2377 = vrot.lane.b32.xlu1 %v2372_v42, %s3484_s21 }
0x2b2b   :  { %2375 = vrot.lane.b32.xlu0 %v2371_v10, %s3484_s21 }
0x2b9c   :  { %v2378_v47 = vpop.permute.xlu1 %2377 }
0x2b9d   :  { %v4030_v37 = vadd.f32 %v3379_v12, %v2378_v47  ;;  %v2376_v48 = vpop.permute.xlu0 %2375 }
0x2b9e   :  { %v4032_v49 = vadd.f32 %v3381_v13, %v2376_v48 }
0x2b9f   :  { %v2394_v38 = vrot.slane %v4030_v37, 4 }
0x2ba0   :  { %v2393_v51 = vrot.slane %v4032_v49, 5 }
0x2ba2   :  { %v2395_v2 = vsel %vm316_vm2, %v2394_v38, %v2393_v51 }
0x2ba3   :  { %2396 = vrot.lane.b32.xlu0 %v2395_v2, %s3482_s0 }
0x2c15   :  { %v2397_v53 = vpop.permute.xlu0 %2396 }
0x2c16   :  { %3177 = vmatmul.mubr.msk.f32.vlgmr.msra.gmra.mxu1 %vm159_vm3, %v2397_v53 }
0x2cd6   :  { %v2466_v0 = vpop.f32.mrf.mxu1 }
0x2cd7   :  { %v2489_v39 = vadd.f32 %v2466_v0, %v3561_v16  ;;  %v2471_v59 = vrot.slane %v2466_v0, 2  ;;  %v2472_v60 = vrot.slane %v2466_v0, 3 }
0x2cd8   :  { %v3178_v54 = vpop.f32.mrf.mxu1 }
0x2cd9   :  { %v2491_v57 = vrot.slane %v2489_v39, 2  ;;  %v2492_v58 = vrot.slane %v2489_v39, 3  ;;  %v2475_v61 = vadd.f32 %v2471_v59, %v3559_v14  ;;  %v2476_v62 = vadd.f32 %v2472_v60, %v3563_v19 }
0x2cdb   :  { %2495 = vrot.lane.b32.xlu0 %v2492_v58, %s3482_s0  ;;  %2493 = vrot.lane.b32.xlu1 %v2491_v57, %s3482_s0  ;;  %v2900_v1 = vmul.f32 -1.442695, %v2475_v61  ;;  %v2901_v5 = vmul.f32 -1.442695, %v2476_v62 }
0x2cdd   :  { %3382 = vpow2.f32 %v2900_v1 }
0x2cde   :  { %3384 = vpow2.f32 %v2901_v5 }
0x2cea   :  { %v3383_v6 = vpop.eup %3382 }
0x2ceb   :  { %v3385_v8 = vpop.eup %3384  ;;  %v2483_v9 = vadd.f32 1.0, %v3383_v6 }
0x2cec   :  { %v2484_v11 = vadd.f32 1.0, %v3385_v8 }
0x2ced   :  { %3386 = vrcp.f32 %v2483_v9 }
0x2cee   :  { %3388 = vrcp.f32 %v2484_v11 }
0x2cfa   :  { %v3387_v12 = vpop.eup %3386 }
0x2cfb   :  { %v3389_v13 = vpop.eup %3388 }
0x2d4d   :  { %v2496_v15 = vpop.permute.xlu0 %2495  ;;  %v2494_v17 = vpop.permute.xlu1 %2493 }
0x2d4e   :  { %v2500_v25 = vmul.f32 %v3389_v13, %v2496_v15  ;;  %v2499_v24 = vmul.f32 %v3387_v12, %v2494_v17 }
0x2d50   :  { %2505 = vrot.lane.b32.xlu0 %v2500_v25, %s3482_s0  ;;  %2503 = vrot.lane.b32.xlu1 %v2499_v24, %s3482_s0 }
0x2dc2   :  { %v2506_v32 = vpop.permute.xlu0 %2505  ;;  %v2504_v35 = vpop.permute.xlu1 %2503 }
0x2dc3   :  { %v2510_v4 = vadd.f32 %v2506_v32, %v3563_v19  ;;  %v2509_v42 = vadd.f32 %v2504_v35, %v3559_v14 }
0x2dc5   :  { %3390 = vtanh.f32 %v2510_v4 }
0x2dc6   :  { %3392 = vtanh.f32 %v2509_v42 }
0x2dd2   :  { %v3391_v46 = vpop.eup %3390 }
0x2dd3   :  { %v3393_v10 = vpop.eup %3392  ;;  %v2516_v47 = vrot.slane %v3391_v46, 1 }
0x2dd4   :  { %v2515_v48 = vrot.slane %v3393_v10, 1 }
0x2dd5   :  { %v2520_v38 = vsub.f32 %v4030_v37, %v2516_v47 }
0x2dd6   :  { %v2519_v51 = vsub.f32 %v4032_v49, %v2515_v48 }
0x2dd7   :  { %v2524_v2 = vrot.slane %v2520_v38, 7 }
0x2dd8   :  { %v2523_v53 = vrot.slane %v2519_v51, 7 }
0x2dd9   :  { %2527 = vrot.lane.b32.xlu0 %v2524_v2, %s3483_s1 }
0x2dda   :  { %2525 = vrot.lane.b32.xlu1 %v2523_v53, %s3483_s1 }
0x2e4b   :  { %v2528_v0 = vpop.permute.xlu0 %2527 }
0x2e4c   :  { %v2532_v39 = vmul.f32 %v3389_v13, %v2528_v0  ;;  %v2526_v54 = vpop.permute.xlu1 %2525 }
0x2e4d   :  { %v2531_v57 = vmul.f32 %v3387_v12, %v2526_v54 }
0x2e4e   :  { %2537 = vrot.lane.b32.xlu0 %v2532_v39, %s3484_s21 }
0x2e4f   :  { %2535 = vrot.lane.b32.xlu1 %v2531_v57, %s3484_s21 }
0x2ec0   :  { %v2538_v58 = vpop.permute.xlu0 %2537 }
0x2ec1   :  { %v4054_v59 = vadd.f32 %v3391_v46, %v2538_v58  ;;  %v2536_v60 = vpop.permute.xlu1 %2535 }
0x2ec2   :  { %v4056_v61 = vadd.f32 %v3393_v10, %v2536_v60 }
0x2ec3   :  { %v2554_v62 = vrot.slane %v4054_v59, 5 }
0x2ec4   :  { %v2553_v1 = vrot.slane %v4056_v61, 6 }
0x2ec6   :  { %v2555_v5 = vsel %vm316_vm2, %v2554_v62, %v2553_v1 }
0x2ec7   :  { %2556 = vrot.lane.b32.xlu1 %v2555_v5, %s3482_s0 }
0x2f39   :  { %v2557_v6 = vpop.permute.xlu1 %2556 }
0x2f3a   :  { %3188 = vmatmul.mubr.msk.f32.vlgmr.msra.gmra.mxu0 %vm159_vm3, %v2557_v6 }
0x2ffa   :  { %v2626_v8 = vpop.f32.mrf.mxu0 }
0x2ffb   :  { %v2649_v9 = vadd.f32 %v2626_v8, %v3561_v16  ;;  %v2631_v15 = vrot.slane %v2626_v8, 1  ;;  %v2632_v17 = vrot.slane %v2626_v8, 2 }
0x2ffc   :  { %v3189_v11 = vpop.f32.mrf.mxu0 }
0x2ffd   :  { %v2651_v12 = vrot.slane %v2649_v9, 1  ;;  %v2652_v13 = vrot.slane %v2649_v9, 2  ;;  %v2635_v25 = vadd.f32 %v2631_v15, %v3559_v14  ;;  %v2636_v24 = vadd.f32 %v2632_v17, %v3563_v19 }
0x2fff   :  { %2655 = vrot.lane.b32.xlu1 %v2652_v13, %s3482_s0  ;;  %2653 = vrot.lane.b32.xlu0 %v2651_v12, %s3482_s0  ;;  %v2903_v32 = vmul.f32 -1.442695, %v2635_v25  ;;  %v2904_v35 = vmul.f32 -1.442695, %v2636_v24 }
0x3001   :  { %3394 = vpow2.f32 %v2903_v32 }
0x3002   :  { %3396 = vpow2.f32 %v2904_v35 }
0x300e   :  { %v3395_v4 = vpop.eup %3394 }
0x300f   :  { %v3397_v42 = vpop.eup %3396  ;;  %v2643_v16 = vadd.f32 1.0, %v3395_v4 }
0x3010   :  { %v2644_v46 = vadd.f32 1.0, %v3397_v42 }
0x3011   :  { %3398 = vrcp.f32 %v2643_v16 }
0x3012   :  { %3400 = vrcp.f32 %v2644_v46 }
0x301e   :  { %v3399_v10 = vpop.eup %3398 }
0x301f   :  { %v3401_v47 = vpop.eup %3400 }
0x3071   :  { %v2656_v48 = vpop.permute.xlu1 %2655  ;;  %v2654_v38 = vpop.permute.xlu0 %2653 }
0x3072   :  { %v2660_v51 = vmul.f32 %v3401_v47, %v2656_v48  ;;  %v2659_v2 = vmul.f32 %v3399_v10, %v2654_v38  ;;  %v2905_v48 = vld [vmem:[#allocation6 + $0x52] ss:$0 sm:$0xff] }
0x3074   :  { %2665 = vrot.lane.b32.xlu1 %v2660_v51, %s3482_s0  ;;  %2663 = vrot.lane.b32.xlu0 %v2659_v2, %s3482_s0 }
0x30e6   :  { %v2666_v53 = vpop.permute.xlu1 %2665  ;;  %v2664_v0 = vpop.permute.xlu0 %2663 }
0x30e7   :  { %v2670_v39 = vadd.f32 %v2666_v53, %v3563_v19  ;;  %v2669_v54 = vadd.f32 %v2664_v0, %v3559_v14 }
0x30e9   :  { %3402 = vtanh.f32 %v2670_v39 }
0x30ea   :  { %3404 = vtanh.f32 %v2669_v54 }
0x30f6   :  { %v4072_v57 = vpop.eup %3402 }
0x30f7   :  { %v3405_v58 = vpop.eup %3404  ;;  %v2676_v60 = vrot.slane %v4072_v57, 1 }
0x30f8   :  { %v2675_v62 = vrot.slane %v3405_v58, 1 }
0x30f9   :  { %v2680_v1 = vsub.f32 %v4054_v59, %v2676_v60 }
0x30fa   :  { %v2679_v5 = vsub.f32 %v4056_v61, %v2675_v62 }
0x30fb   :  { %v2684_v6 = vrot.slane %v2680_v1, 7 }
0x30fc   :  { %v2683_v8 = vrot.slane %v2679_v5, 7 }
0x30fd   :  { %2687 = vrot.lane.b32.xlu1 %v2684_v6, %s3483_s1 }
0x30fe   :  { %2685 = vrot.lane.b32.xlu0 %v2683_v8, %s3483_s1 }
0x3101   :  { %465 = vrot.lane.b32.xlu1 %v3616_v43, %s3482_s0  ;;  %v47_v43 = vld [vmem:[#allocation6 + $0x38] sm:$0xff] }
0x316f   :  { %v2688_v14 = vpop.permute.xlu1 %2687 }
0x3170   :  { %v2692_v19 = vmul.f32 %v3401_v47, %v2688_v14  ;;  %v2686_v9 = vpop.permute.xlu0 %2685 }
0x3171   :  { %v2691_v11 = vmul.f32 %v3399_v10, %v2686_v9 }
0x3172   :  { %2697 = vrot.lane.b32.xlu1 %v2692_v19, %s3484_s21 }
0x3173   :  { %2695 = vrot.lane.b32.xlu0 %v2691_v11, %s3484_s21  ;;  %v466_v12 = vpop.permute.xlu1 %465 }
0x3174   :  { %472 = vst.msk [vmem:[#allocation2] sm:$0x2] %vm471_vm4, %v466_v12 }
0x3176   :  { %786 = vrot.lane.b32.xlu1 %v3686_v31, %s3482_s0 }
0x3177   :  { %306 = vrot.lane.b32.xlu0 %v3584_v56, %s3482_s0  ;;  %v48_v56 = vld [vmem:[#allocation6 + $0x40] sm:$0xff] }
0x317a   :  { %1108 = vrot.lane.b32.xlu1 %v3754_v30, %s3482_s0 }
0x317b   :  { %625 = vrot.lane.b32.xlu0 %v3652_v36, %s3482_s0 }
0x317e   :  { %1430 = vrot.lane.b32.xlu1 %v3830_v33, %s3482_s0 }
0x317f   :  { %947 = vrot.lane.b32.xlu0 %v3720_v28, %s3482_s0 }
0x3182   :  { %1746 = vrot.lane.b32.xlu1 %v3896_v7, %s3482_s0 }
0x3183   :  { %1269 = vrot.lane.b32.xlu0 %v3788_v22, %s3482_s0 }
0x3186   :  { %2065 = vrot.lane.b32.xlu1 %v3966_v3, %s3482_s0 }
0x3187   :  { %1589 = vrot.lane.b32.xlu0 %v3864_v41, %s3482_s0 }
0x318a   :  { %2385 = vrot.lane.b32.xlu1 %v4032_v49, %s3482_s0 }
0x318b   :  { %1905 = vrot.lane.b32.xlu0 %v3932_v52, %s3482_s0 }
0x318e   :  { %467 = vrot.lane.b32.xlu1 %v3618_v44, %s3482_s0  ;;  %v46_v44 = vld [vmem:[#allocation6 + $0x30] sm:$0xff] }
0x318f   :  { %2225 = vrot.lane.b32.xlu0 %v3999_v21, %s3482_s0 }
0x3192   :  { %788 = vrot.lane.b32.xlu1 %v3684_v29, %s3482_s0 }
0x3193   :  { %2545 = vrot.lane.b32.xlu0 %v4056_v61, %s3482_s0 }
0x3196   :  { %1110 = vrot.lane.b32.xlu1 %v3752_v23, %s3482_s0 }
0x3197   :  { %308 = vrot.lane.b32.xlu0 %v3582_v55, %s3482_s0  ;;  %v49_v55 = vld [vmem:[#allocation6 + $0x48] sm:$0xff] }
0x3198   :  { %3190 = vmatprep.subr.mxu1 %v49_v55 }
0x3199   :  { %3191 = vmatpush3.msra.mxu1 %v49_v55 }
0x319a   :  { %1432 = vrot.lane.b32.xlu1 %v3828_v27, %s3482_s0  ;;  %3192 = vmatprep.subr.mxu1 %v48_v56 }
0x319b   :  { %627 = vrot.lane.b32.xlu0 %v3650_v34, %s3482_s0  ;;  %3193 = vmatpush3.msra.mxu1 %v48_v56 }
0x319c   :  { %3194 = vmatprep.subr.mxu1 %v47_v43 }
0x319d   :  { %3195 = vmatpush3.msra.mxu1 %v47_v43 }
0x319e   :  { %1748 = vrot.lane.b32.xlu1 %v3898_v45, %s3482_s0  ;;  %3196 = vmatprep.subr.mxu1 %v46_v44 }
0x319f   :  { %949 = vrot.lane.b32.xlu0 %v3718_v26, %s3482_s0  ;;  %3197 = vmatpush3.msra.mxu1 %v46_v44 }
0x31a2   :  { %2067 = vrot.lane.b32.xlu1 %v3964_v63, %s3482_s0 }
0x31a3   :  { %1271 = vrot.lane.b32.xlu0 %v3786_v20, %s3482_s0 }
0x31a6   :  { %2387 = vrot.lane.b32.xlu1 %v4030_v37, %s3482_s0 }
0x31a7   :  { %1591 = vrot.lane.b32.xlu0 %v3862_v40, %s3482_s0 }
0x31ab   :  { %1907 = vrot.lane.b32.xlu0 %v3930_v50, %s3482_s0 }
0x31af   :  { %2227 = vrot.lane.b32.xlu0 %v3997_v18, %s3482_s0 }
0x31b3   :  { %2547 = vrot.lane.b32.xlu0 %v4054_v59, %s3482_s0 }
0x31e4   :  { %v2698_v34 = vpop.permute.xlu1 %2697 }
0x31e5   :  { %v2696_v36 = vpop.permute.xlu0 %2695  ;;  %v2702_v28 = vadd.f32 %v4072_v57, %v2698_v34 }
0x31e6   :  { %v2701_v29 = vadd.f32 %v3405_v58, %v2696_v36 }
0x31e8   :  { %2705 = vrot.lane.b32.xlu1 %v2701_v29, %s3482_s0  ;;  %v787_v31 = vpop.permute.xlu1 %786 }
0x31e9   :  { %793 = vst.msk [vmem:[#allocation2] sm:$0x8] %vm792_vm5, %v787_v31  ;;  %v307_v26 = vpop.permute.xlu0 %306 }
0x31ea   :  { %313 = vst.msk [vmem:[#allocation2] sm:$0x1] %vm312_vm6, %v307_v26 }
0x31ec   :  { %2707 = vrot.lane.b32.xlu1 %v2702_v28, %s3482_s0  ;;  %v1109_v23 = vpop.permute.xlu1 %1108 }
0x31ed   :  { %1115 = vst.msk [vmem:[#allocation2] sm:$0x20] %vm1114_vm7, %v1109_v23  ;;  %v626_v30 = vpop.permute.xlu0 %625 }
0x31ee   :  { %632 = vst.msk [vmem:[#allocation2] sm:$0x4] %vm631_vm8, %v626_v30 }
0x31f0   :  { %v1431_v20 = vpop.permute.xlu1 %1430 }
0x31f1   :  { %1437 = vst.msk [vmem:[#allocation2] sm:$0x80] %vm1436_vm9, %v1431_v20  ;;  %v948_v22 = vpop.permute.xlu0 %947 }
0x31f2   :  { %954 = vst.msk [vmem:[#allocation2] sm:$0x10] %vm953_vm10, %v948_v22 }
0x31f4   :  { %v1747_v27 = vpop.permute.xlu1 %1746 }
0x31f5   :  { %1752 = vst.msk [vmem:[#allocation2 + $0x8] sm:$0x2] %vm471_vm4, %v1747_v27  ;;  %v1270_v33 = vpop.permute.xlu0 %1269 }
0x31f6   :  { %1276 = vst.msk [vmem:[#allocation2] sm:$0x40] %vm1275_vm11, %v1270_v33 }
0x31f8   :  { %v2066_v40 = vpop.permute.xlu1 %2065 }
0x31f9   :  { %2071 = vst.msk [vmem:[#allocation2 + $0x8] sm:$0x8] %vm792_vm5, %v2066_v40  ;;  %v1590_v41 = vpop.permute.xlu0 %1589 }
0x31fa   :  { %1595 = vst.msk [vmem:[#allocation2 + $0x8] sm:$0x1] %vm312_vm6, %v1590_v41 }
0x31fc   :  { %v2386_v7 = vpop.permute.xlu1 %2385 }
0x31fd   :  { %2391 = vst.msk [vmem:[#allocation2 + $0x8] sm:$0x20] %vm1114_vm7, %v2386_v7  ;;  %v1906_v45 = vpop.permute.xlu0 %1905  ;;  %v2713_v50 = vld [vmem:[#allocation2] sm:$0xff] }
0x31fe   :  { %1911 = vst.msk [vmem:[#allocation2 + $0x8] sm:$0x4] %vm631_vm8, %v1906_v45  ;;  %3198 = vmatprep.mubr.msk.f32.mxu1 %vm159_vm3, %v2713_v50 }
0x3200   :  { %v468_v52 = vpop.permute.xlu1 %467 }
0x3201   :  { %473 = vst.msk [vmem:[#allocation2 + $0x10] sm:$0x2] %vm471_vm4, %v468_v52  ;;  %v2226_v63 = vpop.permute.xlu0 %2225 }
0x3202   :  { %2231 = vst.msk [vmem:[#allocation2 + $0x8] sm:$0x10] %vm953_vm10, %v2226_v63 }
0x3204   :  { %v789_v3 = vpop.permute.xlu1 %788 }
0x3205   :  { %794 = vst.msk [vmem:[#allocation2 + $0x10] sm:$0x8] %vm792_vm5, %v789_v3  ;;  %v2546_v18 = vpop.permute.xlu0 %2545 }
0x3206   :  { %2551 = vst.msk [vmem:[#allocation2 + $0x8] sm:$0x40] %vm1275_vm11, %v2546_v18 }
0x3208   :  { %v1111_v21 = vpop.permute.xlu1 %1110 }
0x3209   :  { %1116 = vst.msk [vmem:[#allocation2 + $0x10] sm:$0x20] %vm1114_vm7, %v1111_v21  ;;  %v309_v37 = vpop.permute.xlu0 %308 }
0x320a   :  { %314 = vst.msk [vmem:[#allocation2 + $0x10] sm:$0x1] %vm312_vm6, %v309_v37 }
0x320c   :  { %v1433_v49 = vpop.permute.xlu1 %1432 }
0x320d   :  { %1438 = vst.msk [vmem:[#allocation2 + $0x10] sm:$0x80] %vm1436_vm9, %v1433_v49  ;;  %v628_v59 = vpop.permute.xlu0 %627 }
0x320e   :  { %633 = vst.msk [vmem:[#allocation2 + $0x10] sm:$0x4] %vm631_vm8, %v628_v59 }
0x3210   :  { %v1749_v61 = vpop.permute.xlu1 %1748 }
0x3211   :  { %1753 = vst.msk [vmem:[#allocation2 + $0x18] sm:$0x2] %vm471_vm4, %v1749_v61  ;;  %v950_v13 = vpop.permute.xlu0 %949 }
0x3212   :  { %955 = vst.msk [vmem:[#allocation2 + $0x10] sm:$0x10] %vm953_vm10, %v950_v13 }
0x3214   :  { %v2068_v15 = vpop.permute.xlu1 %2067 }
0x3215   :  { %2072 = vst.msk [vmem:[#allocation2 + $0x18] sm:$0x8] %vm792_vm5, %v2068_v15  ;;  %v1272_v17 = vpop.permute.xlu0 %1271 }
0x3216   :  { %1277 = vst.msk [vmem:[#allocation2 + $0x10] sm:$0x40] %vm1275_vm11, %v1272_v17 }
0x3218   :  { %v2388_v25 = vpop.permute.xlu1 %2387 }
0x3219   :  { %2392 = vst.msk [vmem:[#allocation2 + $0x18] sm:$0x20] %vm1114_vm7, %v2388_v25  ;;  %v1592_v24 = vpop.permute.xlu0 %1591 }
0x321a   :  { %1596 = vst.msk [vmem:[#allocation2 + $0x18] sm:$0x1] %vm312_vm6, %v1592_v24 }
0x321d   :  { %v1908_v32 = vpop.permute.xlu0 %1907  ;;  %v2715_v10 = vld [vmem:[#allocation2 + $0x10] sm:$0xff] }
0x321e   :  { %1912 = vst.msk [vmem:[#allocation2 + $0x18] sm:$0x4] %vm631_vm8, %v1908_v32 }
0x3221   :  { %v2228_v35 = vpop.permute.xlu0 %2227 }
0x3222   :  { %2232 = vst.msk [vmem:[#allocation2 + $0x18] sm:$0x10] %vm953_vm10, %v2228_v35 }
0x3225   :  { %v2548_v4 = vpop.permute.xlu0 %2547 }
0x3226   :  { %2552 = vst.msk [vmem:[#allocation2 + $0x18] sm:$0x40] %vm1275_vm11, %v2548_v4 }
0x325a   :  { %v2706_v42 = vpop.permute.xlu1 %2705 }
0x325b   :  { %2711 = vst.msk [vmem:[#allocation2 + $0x8] sm:$0x80] %vm1436_vm9, %v2706_v42 }
0x325e   :  { %v2708_v16 = vpop.permute.xlu1 %2707 }
0x325f   :  { %2712 = vst.msk [vmem:[#allocation2 + $0x18] sm:$0x80] %vm1436_vm9, %v2708_v16 }
0x3262   :  { %v2714_v46 = vld [vmem:[#allocation2 + $0x8] sm:$0xff] }
0x3263   :  { %3199 = vmatmul.mubr.msk.f32.vlgmr.msra.gmra.mxu1 %vm159_vm3, %v2714_v46 }
0x3264   :  { %3201 = vmatprep.mubr.msk.f32.mxu1 %vm159_vm3, %v2715_v10 }
0x3266   :  { %v2716_v47 = vld [vmem:[#allocation2 + $0x18] sm:$0xff] }
0x3267   :  { %3202 = vmatmul.mubr.msk.f32.gmra.mxu1 %vm159_vm3, %v2716_v47 }
0x3323   :  { %v3200_v38 = vpop.f32.mrf.mxu1 }
0x3324   :  { %v2805_v51 = vadd.f32 %v3200_v38, %v2905_v48 }
0x3325   :  { %v2799_v2 = vpop.f32.mrf.mxu1 }
0x3326   :  { %vm2819_vm12 = vcmp.gt.f32.partialorder %v2805_v51, 0.0  ;;  %v2823_v53 = vmul.f32 0.01, %v2805_v51  ;;  %v2800_v0 = vadd.f32 %v2905_v48, %v2799_v2 }
0x3327   :  { %v3203_v39 = vpop.f32.mrf.mxu1 }
0x3328   :  { %v2827_v54 = vsel %vm2819_vm12, %v2805_v51, %v2823_v53  ;;  %vm2818_vm13 = vcmp.gt.f32.partialorder %v2800_v0, 0.0  ;;  %v2822_v57 = vmul.f32 0.01, %v2800_v0  ;;  %v2815_v58 = vadd.f32 %v3203_v39, %v2905_v48 }
0x3329   :  { %2831 = vst.msk [vmem:[#allocation8 + $0x8] sm:$0xff] %vm61_vm1, %v2827_v54  ;;  %v2809_v60 = vpop.f32.mrf.mxu1 }
0x332a   :  { %v2826_v62 = vsel %vm2818_vm13, %v2800_v0, %v2822_v57  ;;  %vm2821_vm14 = vcmp.gt.f32.partialorder %v2815_v58, 0.0  ;;  %v2825_v1 = vmul.f32 0.01, %v2815_v58  ;;  %v2810_v5 = vadd.f32 %v2905_v48, %v2809_v60 }
0x332b   :  { %2830 = vst.msk [vmem:[#allocation8] sm:$0xff] %vm61_vm1, %v2826_v62 }
0x332c   :  { %v2829_v6 = vsel %vm2821_vm14, %v2815_v58, %v2825_v1  ;;  %vm2820_vm15 = vcmp.gt.f32.partialorder %v2810_v5, 0.0  ;;  %v2824_v8 = vmul.f32 0.01, %v2810_v5 }
0x332d   :  { %2833 = vst.msk [vmem:[#allocation8 + $0x18] sm:$0xff] %vm61_vm1, %v2829_v6 }
0x332e   :  { %v2828_v14 = vsel %vm2820_vm15, %v2810_v5, %v2824_v8 }
0x332f   :  { %2832 = vst.msk [vmem:[#allocation8 + $0x10] sm:$0xff] %vm61_vm1, %v2828_v14 }
0x3330   :  { %3461 = shalt.err (!%p3458_p0)
}
0x3331   :  { %2845 = dma.vmem_to_hbm [thread:$0]  %s2840_s23, 512, %s4192_s2, [#allocation5], %s3477_s12, %s3477_s12, %s3478_s13  }
0x3332   :  { %3474 = dma.done.wait [#allocation5], 512  }
0x3333   :  { %3475 = vsyncadd [#allocation5], 4294966784 }
0x3334   :  { %2849 = vsyncpa [#allocation4], 1 }
0x3335   :  { %2850 = vsyncpa [#allocation7], 1 }
0x3336   :  { %2851 = vsyncpa [#allocation5], 1 }

</bundles_post_ra>
